<compile_context>
chip_gen: v7x
topology: tpu7x:2x2x1
jax: 0.10.0
libtpu: 0.0.40
codegen_flags: <defaults>
</compile_context>

<pallas_src>
import functools

import jax
import jax.numpy as jnp
from jax.experimental import pallas as pl
from jax.experimental.pallas import tpu as pltpu


def mlp_kernel(x_ref, w1_ref, b1_ref, w2_ref, b2_ref, w3_ref, b3_ref, o_ref):
    x = x_ref[...]                                            # (tb, dim)

    # proj_in: Linear(dim, 2*dim) + ReLU            (MXU, f32 accumulation)
    h1 = jnp.dot(x, w1_ref[...], preferred_element_type=jnp.float32)
    h1 = jnp.maximum(h1 + b1_ref[...], 0.0)

    # proj_mid: Linear(2*dim, dim) + ReLU           (FiLM #1 folded into w2/b2)
    h1 = h1.astype(w2_ref.dtype)
    h2 = jnp.dot(h1, w2_ref[...], preferred_element_type=jnp.float32)
    h2 = jnp.maximum(h2 + b2_ref[...], 0.0)

    # proj_out: Linear(dim, 1)                      (FiLM #2 folded into w3/b3)
    # N=1 matmul replaced by VPU multiply + lane reduction.
    w3_row = w3_ref[...].astype(jnp.float32)                  # (1, dim)
    out = jnp.sum(h2 * w3_row, axis=-1, keepdims=True)        # (tb, 1)
    o_ref[...] = (out + b3_ref[...]).astype(o_ref.dtype)


def _choose_tb(batch, target):
    """Largest power-of-two-ish tile <= target that divides batch."""
    tb = min(target, batch)
    while tb > 8 and batch % tb != 0:
        tb //= 2
    if batch % tb != 0:
        tb = batch
    return tb


@functools.partial(jax.jit, static_argnames=("tb", "compute_dtype"))
def mlp_forward(x, params, tb=512, compute_dtype=None):
    """x: (B, dim). Weights stored transposed vs. nn.Linear, i.e. (in, out)."""
    B, dim = x.shape
    hid = 2 * dim

    # ---- FiLM folding (plain JAX, outside the kernel, inside jit) ----------
    w1, b1 = params["w1"], params["b1"]          # (dim, hid), (1, hid)
    g1, be1 = params["g1"], params["be1"]        # (1, hid)
    w2, b2 = params["w2"], params["b2"]          # (hid, dim), (1, dim)
    g2, be2 = params["g2"], params["be2"]        # (1, dim)
    w3, b3 = params["w3"], params["b3"]          # (dim, 1), (1, 1)

    w2_eff = g1.reshape(hid, 1) * w2             # diag(g1) @ w2
    b2_eff = be1 @ w2 + b2
    w3_eff = (g2.reshape(dim, 1) * w3).reshape(1, dim)   # row vector for VPU reduce
    b3_eff = be2 @ w3 + b3                       # (1, 1)

    cdt = jnp.dtype(compute_dtype) if compute_dtype is not None else jnp.dtype(x.dtype)
    xk = x.astype(cdt)
    w1k = w1.astype(cdt)
    w2k = w2_eff.astype(cdt)
    w3k = w3_eff.astype(cdt)
    b1k = b1.astype(jnp.float32)
    b2k = b2_eff.astype(jnp.float32)
    b3k = b3_eff.astype(jnp.float32)

    tbb = _choose_tb(B, tb)
    grid = (B // tbb,)

    full2 = lambda shape: pl.BlockSpec(shape, lambda i: (0, 0))

    # Cost / VMEM bookkeeping.
    flops = 2 * B * dim * hid + 2 * B * hid * dim + 2 * B * dim
    w_bytes = (w1k.size + w2k.size + w3k.size) * cdt.itemsize \
        + (b1k.size + b2k.size + b3k.size) * 4
    bytes_accessed = B * dim * cdt.itemsize + B * jnp.dtype(x.dtype).itemsize + w_bytes
    act_bytes = 2 * tbb * dim * cdt.itemsize + 2 * tbb * 4        # double-buffered x/out
    live_bytes = tbb * hid * 4 + tbb * dim * 4                    # f32 intermediates
    vmem_limit = int(min(max(2 * (2 * w_bytes + act_bytes + live_bytes), 16 << 20),
                         64 << 20))

    return pl.pallas_call(
        mlp_kernel,
        out_shape=jax.ShapeDtypeStruct((B, 1), x.dtype),
        grid_spec=pltpu.PrefetchScalarGridSpec(
            num_scalar_prefetch=0,
            grid=grid,
            in_specs=[
                pl.BlockSpec((tbb, dim), lambda i: (i, 0)),       # x
                full2((dim, hid)), full2((1, hid)),               # w1, b1
                full2((hid, dim)), full2((1, dim)),               # w2', b2' (FiLM1 folded)
                full2((1, dim)), full2((1, 1)),                   # w3' row, b3' (FiLM2 folded)
            ],
            out_specs=pl.BlockSpec((tbb, 1), lambda i: (i, 0)),
        ),
        compiler_params=pltpu.CompilerParams(
            dimension_semantics=("parallel",),
            vmem_limit_bytes=vmem_limit),
        cost_estimate=pl.CostEstimate(
            flops=flops, transcendentals=0, bytes_accessed=bytes_accessed),
    )(xk, w1k, b1k, w2k, b2k, w3k, b3k)


def init_params(key, dim):
    """Deterministic synthetic params. Linear weights stored as (in, out)."""
    hid = 2 * dim
    ks = jax.random.split(key, 10)
    s1 = 1.0 / jnp.sqrt(dim)
    s2 = 1.0 / jnp.sqrt(hid)
    return {
        "w1": jax.random.uniform(ks[0], (dim, hid), jnp.float32, -s1, s1),
        "b1": jax.random.uniform(ks[1], (1, hid), jnp.float32, -s1, s1),
        "g1": 1.0 + 0.1 * jax.random.normal(ks[2], (1, hid), jnp.float32),
        "be1": 0.1 * jax.random.normal(ks[3], (1, hid), jnp.float32),
        "w2": jax.random.uniform(ks[4], (hid, dim), jnp.float32, -s2, s2),
        "b2": jax.random.uniform(ks[5], (1, dim), jnp.float32, -s2, s2),
        "g2": 1.0 + 0.1 * jax.random.normal(ks[6], (1, dim), jnp.float32),
        "be2": 0.1 * jax.random.normal(ks[7], (1, dim), jnp.float32),
        "w3": jax.random.uniform(ks[8], (dim, 1), jnp.float32, -s1, s1),
        "b3": jax.random.uniform(ks[9], (1, 1), jnp.float32, -s1, s1),
    }


def mlp_reference(x, p):
    h1 = jnp.maximum(x @ p["w1"] + p["b1"], 0.0)
    h1 = h1 * p["g1"] + p["be1"]
    h2 = jnp.maximum(h1 @ p["w2"] + p["b2"], 0.0)
    h2 = h2 * p["g2"] + p["be2"]
    return h2 @ p["w3"] + p["b3"]


if __name__ == "__main__":
    key = jax.random.PRNGKey(0)
    dim = 32
    B = 1024  # small, but enough for 512-row MXU tiles and a 2-step grid
    kx, kp = jax.random.split(key)
    x = jax.random.normal(kx, (B, dim), jnp.float32)
    params = init_params(kp, dim)

    out = mlp_forward(x, params, tb=512)   # grid=(2,): both TCs busy on v7x
    jax.block_until_ready(out)

    ref = mlp_reference(x, params)
    assert out.shape == (B, 1), out.shape
    err = float(jnp.max(jnp.abs(out - ref)))
    assert jnp.allclose(out, ref, atol=1e-4, rtol=1e-4), err

    print("KERNEL_OK")
</pallas_src>

<mosaic_0001>
module attributes {stable_mosaic.version = 11 : i64} {
  func.func @mlp_kernel(%arg0: i32, %arg1: memref<512x32xf32, #tpu.memory_space<vmem>>, %arg2: memref<32x64xf32, #tpu.memory_space<vmem>>, %arg3: memref<1x64xf32, #tpu.memory_space<vmem>>, %arg4: memref<64x32xf32, #tpu.memory_space<vmem>>, %arg5: memref<1x32xf32, #tpu.memory_space<vmem>>, %arg6: memref<1x32xf32, #tpu.memory_space<vmem>>, %arg7: memref<1x1xf32, #tpu.memory_space<vmem>>, %arg8: memref<512x1xf32, #tpu.memory_space<vmem>>) attributes {dimension_semantics = [#tpu.dimension_semantics<parallel>], iteration_bounds = array<i64: 2>, scalar_prefetch = 0 : i64, scratch_operands = 0 : i64, tpu.core_type = #tpu.core_type<tc>, window_params = [{transform_indices = @transform_0, window_bounds = array<i64: 512, 32>}, {pipeline_mode = #tpu.pipeline_mode<synchronous>, transform_indices = @transform_1, window_bounds = array<i64: 32, 64>}, {pipeline_mode = #tpu.pipeline_mode<synchronous>, transform_indices = @transform_2, window_bounds = array<i64: 1, 64>}, {pipeline_mode = #tpu.pipeline_mode<synchronous>, transform_indices = @transform_3, window_bounds = array<i64: 64, 32>}, {pipeline_mode = #tpu.pipeline_mode<synchronous>, transform_indices = @transform_4, window_bounds = array<i64: 1, 32>}, {pipeline_mode = #tpu.pipeline_mode<synchronous>, transform_indices = @transform_5, window_bounds = array<i64: 1, 32>}, {pipeline_mode = #tpu.pipeline_mode<synchronous>, transform_indices = @transform_6, window_bounds = array<i64: 1, 1>}, {transform_indices = @transform_7, window_bounds = array<i64: 512, 1>}]} {
    %c0 = arith.constant 0 : index
    %c0_0 = arith.constant 0 : index
    %0 = vector.load %arg1[%c0, %c0_0] : memref<512x32xf32, #tpu.memory_space<vmem>>, vector<512x32xf32>
    %c0_1 = arith.constant 0 : index
    %c0_2 = arith.constant 0 : index
    %1 = vector.load %arg2[%c0_1, %c0_2] : memref<32x64xf32, #tpu.memory_space<vmem>>, vector<32x64xf32>
    %cst = arith.constant dense<0.000000e+00> : vector<512x64xf32>
    %2 = tpu.matmul %0, %1, %cst {dimension_numbers = #tpu.dot_dimension_numbers<[1], [0], [0], [1], [0, 0, 1, 1], [], []>} : vector<512x32xf32>, vector<32x64xf32>, vector<512x64xf32> -> vector<512x64xf32>
    %c0_3 = arith.constant 0 : index
    %c0_4 = arith.constant 0 : index
    %3 = vector.load %arg3[%c0_3, %c0_4] : memref<1x64xf32, #tpu.memory_space<vmem>>, vector<1x64xf32>
    %4 = vector.broadcast %3 : vector<1x64xf32> to vector<512x64xf32>
    %5 = arith.addf %2, %4 : vector<512x64xf32>
    %cst_5 = arith.constant 0.000000e+00 : f32
    %6 = vector.broadcast %cst_5 : f32 to vector<512x64xf32>
    %7 = arith.maximumf %5, %6 : vector<512x64xf32>
    %c0_6 = arith.constant 0 : index
    %c0_7 = arith.constant 0 : index
    %8 = vector.load %arg4[%c0_6, %c0_7] : memref<64x32xf32, #tpu.memory_space<vmem>>, vector<64x32xf32>
    %cst_8 = arith.constant dense<0.000000e+00> : vector<512x32xf32>
    %9 = tpu.matmul %7, %8, %cst_8 {dimension_numbers = #tpu.dot_dimension_numbers<[1], [0], [0], [1], [0, 0, 1, 1], [], []>} : vector<512x64xf32>, vector<64x32xf32>, vector<512x32xf32> -> vector<512x32xf32>
    %c0_9 = arith.constant 0 : index
    %c0_10 = arith.constant 0 : index
    %10 = vector.load %arg5[%c0_9, %c0_10] : memref<1x32xf32, #tpu.memory_space<vmem>>, vector<1x32xf32>
    %11 = vector.broadcast %10 : vector<1x32xf32> to vector<512x32xf32>
    %12 = arith.addf %9, %11 : vector<512x32xf32>
    %cst_11 = arith.constant 0.000000e+00 : f32
    %13 = vector.broadcast %cst_11 : f32 to vector<512x32xf32>
    %14 = arith.maximumf %12, %13 : vector<512x32xf32>
    %c0_12 = arith.constant 0 : index
    %c0_13 = arith.constant 0 : index
    %15 = vector.load %arg6[%c0_12, %c0_13] : memref<1x32xf32, #tpu.memory_space<vmem>>, vector<1x32xf32>
    %16 = vector.broadcast %15 : vector<1x32xf32> to vector<512x32xf32>
    %17 = arith.mulf %14, %16 : vector<512x32xf32>
    %cst_14 = arith.constant dense<0.000000e+00> : vector<512xf32>
    %18 = vector.multi_reduction <add>, %17, %cst_14 [1] : vector<512x32xf32> to vector<512xf32>
    %19 = vector.shape_cast %18 : vector<512xf32> to vector<512x1xf32>
    %c0_15 = arith.constant 0 : index
    %c0_16 = arith.constant 0 : index
    %20 = vector.load %arg7[%c0_15, %c0_16] : memref<1x1xf32, #tpu.memory_space<vmem>>, vector<1x1xf32>
    %21 = vector.broadcast %20 : vector<1x1xf32> to vector<512x1xf32>
    %22 = arith.addf %19, %21 : vector<512x1xf32>
    %c0_17 = arith.constant 0 : index
    %c0_18 = arith.constant 0 : index
    %23 = vector.load %arg8[%c0_17, %c0_18] : memref<512x1xf32, #tpu.memory_space<vmem>>, vector<512x1xf32>
    tpu.vector_store %arg8[%c0_17, %c0_18], %22 {strides = array<i32>} : memref<512x1xf32, #tpu.memory_space<vmem>>, vector<512x1xf32>,
    return
  }
  func.func @transform_0(%arg0: i32) -> (i32, i32) {
    %c0_i32 = arith.constant 0 : i32
    %c0_i32_0 = arith.constant 0 : i32
    return %arg0, %c0_i32 : i32, i32
  }
  func.func @transform_1(%arg0: i32) -> (i32, i32) {
    %c0_i32 = arith.constant 0 : i32
    %c0_i32_0 = arith.constant 0 : i32
    %c0_i32_1 = arith.constant 0 : i32
    return %c0_i32, %c0_i32_0 : i32, i32
  }
  func.func @transform_2(%arg0: i32) -> (i32, i32) {
    %c0_i32 = arith.constant 0 : i32
    %c0_i32_0 = arith.constant 0 : i32
    %c0_i32_1 = arith.constant 0 : i32
    return %c0_i32, %c0_i32_0 : i32, i32
  }
  func.func @transform_3(%arg0: i32) -> (i32, i32) {
    %c0_i32 = arith.constant 0 : i32
    %c0_i32_0 = arith.constant 0 : i32
    %c0_i32_1 = arith.constant 0 : i32
    return %c0_i32, %c0_i32_0 : i32, i32
  }
  func.func @transform_4(%arg0: i32) -> (i32, i32) {
    %c0_i32 = arith.constant 0 : i32
    %c0_i32_0 = arith.constant 0 : i32
    %c0_i32_1 = arith.constant 0 : i32
    return %c0_i32, %c0_i32_0 : i32, i32
  }
  func.func @transform_5(%arg0: i32) -> (i32, i32) {
    %c0_i32 = arith.constant 0 : i32
    %c0_i32_0 = arith.constant 0 : i32
    %c0_i32_1 = arith.constant 0 : i32
    return %c0_i32, %c0_i32_0 : i32, i32
  }
  func.func @transform_6(%arg0: i32) -> (i32, i32) {
    %c0_i32 = arith.constant 0 : i32
    %c0_i32_0 = arith.constant 0 : i32
    %c0_i32_1 = arith.constant 0 : i32
    return %c0_i32, %c0_i32_0 : i32, i32
  }
  func.func @transform_7(%arg0: i32) -> (i32, i32) {
    %c0_i32 = arith.constant 0 : i32
    %c0_i32_0 = arith.constant 0 : i32
    return %arg0, %c0_i32 : i32, i32
  }
}

</mosaic_0001>

<bundles_post_ra>
// kernel: mlp_forward.1
= control target key start
LH: loop header
LB: loop body
LE: loop exit
PB: predicated region body
PF: predicated region fallthrough
CT: control target
= control target key end

     0   :  { %s2703_s26 = smov 0   ;;  %s3424_s0 = inlined_call_operand.vmem [shape: f32[1024,32], index: 0, kind: input, shape index: {}]   ;;  %s3425_s1 = inlined_call_operand.vmem [shape: f32[32,64], index: 1, kind: input, shape index: {}]   ;;  %s3426_s2 = inlined_call_operand.vmem [shape: f32[1,64], index: 2, kind: input, shape index: {}]   ;;  %s3427_s3 = inlined_call_operand.vmem [shape: f32[64,32], index: 3, kind: input, shape index: {}]   ;;  %s3428_s4 = inlined_call_operand.vmem [shape: f32[1,32], index: 4, kind: input, shape index: {}]   ;;  %s3429_s5 = inlined_call_operand.vmem [shape: f32[1,32], index: 5, kind: input, shape index: {}]   ;;  %s3430_s6 = inlined_call_operand.<no memory space> [shape: f32[1,1], index: 6, kind: input, shape index: {}]   ;;  %s3431_s7 = inlined_call_operand.vmem [shape: f32[1024,1], index: 7, kind: output, shape index: {}]  }
   0x1   :  { %v12_v0 = vstv %s3430_s6 }
   0x2   :  { %13 = vst [vmem:[#allocation2] sm:$0x1] %v12_v0 }
   0x3 LB: > { %s2113_s27 = sadd.s32 4294967295, %s2658_s26   ;;  %p2117_p0 = scmp.ge.s32.totalorder %s2658_s26, 1  ;;  %s2658_s26 = sphi %s2703_s26, %s19_s26  }
   0x4   : > { %p240_p1 = scmp.lt.s32.totalorder %s2658_s26, 3 }
   0x6   : > { %p241_p2 = pnand %p2117_p0, %p240_p1 }
   0x7   : > { %v348_v1 = vld [vmem:[%s3425_s1] sm:$0xff] (!%p241_p2)  ;;  %v349_v2 = vld [vmem:[%s3425_s1 + $0x8] sm:$0xff] (!%p241_p2)  ;;  %v350_v3 = vld [vmem:[%s3425_s1 + $0x10] sm:$0xff] (!%p241_p2)  ;;  %s2118_s10 = sshll.u32 (!%p241_p2), %s2113_s27, 6  ;;  %vm359_vm0 = vcmask (!%p241_p2), 261120   ;;  %vm1016_vm1 = vcmask (!%p241_p2), 523264  }
   0x8   : > { %244 = sbr.rel (%p241_p2) target bundleno = 730 (0x2da), region = 48  ;;  %v2612_v4 = vpack.c.bf16 (!%p241_p2), %v349_v2, %v348_v1  ;;  %v351_v5 = vld [vmem:[%s3425_s1 + $0x18] sm:$0xff] (!%p241_p2)  ;;  %p273_p3 = scmp.lt.s32.totalorder (!%p241_p2), %s2118_s10, 127  ;;  %v1001_v6 = vld [vmem:[%s3427_s3] sm:$0xff] (!%p241_p2)  ;;  %v1002_v7 = vld [vmem:[%s3427_s3 + $0x8] sm:$0xff] (!%p241_p2)  ;;  %vm1992_vm2 = vcmask (!%p241_p2), 7168  }
   0x9   : > { %v2616_v8 = vpack.c.bf16 (!%p241_p2), %v351_v5, %v350_v3  ;;  %v2620_v9 = vpack.c.bf16 (!%p241_p2), %v1002_v7, %v1001_v6  ;;  %v1003_v22 = vld [vmem:[%s3427_s3 + $0x10] sm:$0xff] (!%p241_p2)  ;;  %v1004_v23 = vld [vmem:[%s3427_s3 + $0x18] sm:$0xff] (!%p241_p2)  ;;  %v1005_v26 = vld [vmem:[%s3427_s3 + $0x20] sm:$0xff] (!%p241_p2) }
   0xa   : > { %2613 = vmatprep.subr.bf16.mxu0 (!%p241_p2), %v2612_v4  ;;  %v2624_v25 = vpack.c.bf16 (!%p241_p2), %v1004_v23, %v1003_v22  ;;  %v1006_v27 = vld [vmem:[%s3427_s3 + $0x28] sm:$0xff] (!%p241_p2)  ;;  %v1007_v29 = vld [vmem:[%s3427_s3 + $0x30] sm:$0xff] (!%p241_p2)  ;;  %v1008_v30 = vld [vmem:[%s3427_s3 + $0x38] sm:$0xff] (!%p241_p2) }
   0xb   : > { %2615 = vmatpush3.bf16.msra.mxu0 (!%p241_p2), %v2612_v4  ;;  %2636 = vmatprep.subr.bf16.mxu1 (!%p241_p2), %v2620_v9  ;;  %v2628_v28 = vpack.c.bf16 (!%p241_p2), %v1006_v27, %v1005_v26  ;;  %v2632_v33 = vpack.c.bf16 (!%p241_p2), %v1008_v30, %v1007_v29 }
   0xc   : > { %2617 = vmatprep.subr.bf16.mxu0 (!%p241_p2), %v2616_v8  ;;  %2640 = vmatpush3.bf16.msra.mxu1 (!%p241_p2), %v2620_v9 }
   0xd   : > { %2637 = vmatprep.subr.bf16.mxu1 (!%p241_p2), %v2624_v25 }
   0xf   : > { %s3433_s10 = smov (!%p273_p3, %s2118_s10), 127  ;;  %2619 = vmatpush3.bf16.msra.mxu0 %v2616_v8 }
  0x10   : > { %s2119_s17 = sshll.u32 %s3433_s10, 3  ;;  %2621 = vmatprep.subr.bf16.mxu0 %v2620_v9  ;;  %2641 = vmatpush3.bf16.msra.mxu1 %v2624_v25 }
  0x11   : > { %s2737_s20 = scalar_lea.vmem %s3424_s0, %s2119_s17  ;;  %2638 = vmatprep.subr.bf16.mxu1 %v2628_v28 }
  0x12   : > { %v284_v10 = vld [vmem:[%s2737_s20] sm:$0xff]  ;;  %v285_v11 = vld [vmem:[%s2737_s20 + $0x8] sm:$0xff]  ;;  %v286_v12 = vld [vmem:[%s2737_s20 + $0x10] sm:$0xff] }
  0x13   : > { %2404 = vmatprep.mubr.msk.f32.mxu0 %vm359_vm0, %v284_v10  ;;  %v287_v13 = vld [vmem:[%s2737_s20 + $0x18] sm:$0xff]  ;;  %v288_v14 = vld [vmem:[%s2737_s20 + $0x20] sm:$0xff]  ;;  %v289_v15 = vld [vmem:[%s2737_s20 + $0x28] sm:$0xff] }
  0x14   : > { %2405 = vmatmul.mubr.msk.f32.vlgmr.msra.gmra.mrb[0].mxu0 %vm359_vm0, %v285_v11  ;;  %v290_v16 = vld [vmem:[%s2737_s20 + $0x30] sm:$0xff]  ;;  %v291_v17 = vld [vmem:[%s2737_s20 + $0x38] sm:$0xff]  ;;  %v292_v18 = vld [vmem:[%s2737_s20 + $0x40] sm:$0xff]  ;;  %2642 = vmatpush3.bf16.msra.mxu1 %v2628_v28 }
  0x15   : > { %2407 = vmatprep.mubr.msk.f32.mxu0 %vm359_vm0, %v286_v12  ;;  %2623 = vmatpush3.bf16.msra.mxu0 %v2620_v9  ;;  %v293_v19 = vld [vmem:[%s2737_s20 + $0x48] sm:$0xff]  ;;  %v294_v20 = vld [vmem:[%s2737_s20 + $0x50] sm:$0xff]  ;;  %v295_v21 = vld [vmem:[%s2737_s20 + $0x58] sm:$0xff] }
  0x16   : > { %v296_v24 = vld [vmem:[%s2737_s20 + $0x60] sm:$0xff]  ;;  %2625 = vmatprep.subr.bf16.mxu0 %v2624_v25  ;;  %v297_v31 = vld [vmem:[%s2737_s20 + $0x68] sm:$0xff]  ;;  %v298_v32 = vld [vmem:[%s2737_s20 + $0x70] sm:$0xff]  ;;  %2639 = vmatprep.subr.bf16.mxu1 %v2632_v33 }
  0x17   : > { %v299_v34 = vld [vmem:[%s2737_s20 + $0x78] sm:$0xff]  ;;  %v300_v35 = vld [vmem:[%s2737_s20 + $0x80] sm:$0xff]  ;;  %v301_v36 = vld [vmem:[%s2737_s20 + $0x88] sm:$0xff] }
  0x18   : > { %2408 = vmatmul.mubr.msk.f32.gmra.mrb[2].mxu0 %vm359_vm0, %v287_v13  ;;  %v302_v37 = vld [vmem:[%s2737_s20 + $0x90] sm:$0xff]  ;;  %2643 = vmatpush3.bf16.msra.mxu1 %v2632_v33  ;;  %v303_v38 = vld [vmem:[%s2737_s20 + $0x98] sm:$0xff]  ;;  %v304_v39 = vld [vmem:[%s2737_s20 + $0xa0] sm:$0xff] }
  0x19   : > { %2410 = vmatprep.mubr.msk.f32.mxu0 %vm359_vm0, %v288_v14  ;;  %2627 = vmatpush3.bf16.msra.mxu0 %v2624_v25  ;;  %v305_v40 = vld [vmem:[%s2737_s20 + $0xa8] sm:$0xff]  ;;  %v306_v41 = vld [vmem:[%s2737_s20 + $0xb0] sm:$0xff]  ;;  %v307_v42 = vld [vmem:[%s2737_s20 + $0xb8] sm:$0xff] }
  0x1a   : > { %2629 = vmatprep.subr.bf16.mxu0 %v2628_v28  ;;  %v308_v43 = vld [vmem:[%s2737_s20 + $0xc0] sm:$0xff]  ;;  %v309_v44 = vld [vmem:[%s2737_s20 + $0xc8] sm:$0xff]  ;;  %v310_v45 = vld [vmem:[%s2737_s20 + $0xd0] sm:$0xff] }
  0x1b   : > { %v311_v46 = vld [vmem:[%s2737_s20 + $0xd8] sm:$0xff]  ;;  %v312_v47 = vld [vmem:[%s2737_s20 + $0xe0] sm:$0xff]  ;;  %v313_v48 = vld [vmem:[%s2737_s20 + $0xe8] sm:$0xff] }
  0x1c   : > { %2411 = vmatmul.mubr.msk.f32.gmra.mrb[4].mxu0 %vm359_vm0, %v289_v15  ;;  %v314_v49 = vld [vmem:[%s2737_s20 + $0xf0] sm:$0xff]  ;;  %v315_v50 = vld [vmem:[%s2737_s20 + $0xf8] sm:$0xff]  ;;  %v316_v51 = vld [vmem:[%s2737_s20 + $0x100] sm:$0xff] }
  0x1d   : > { %2413 = vmatprep.mubr.msk.f32.mxu0 %vm359_vm0, %v290_v16  ;;  %2631 = vmatpush3.bf16.msra.mxu0 %v2628_v28  ;;  %v317_v52 = vld [vmem:[%s2737_s20 + $0x108] sm:$0xff]  ;;  %v318_v53 = vld [vmem:[%s2737_s20 + $0x110] sm:$0xff]  ;;  %v319_v54 = vld [vmem:[%s2737_s20 + $0x118] sm:$0xff] }
  0x1e   : > { %2633 = vmatprep.subr.bf16.mxu0 %v2632_v33  ;;  %v320_v55 = vld [vmem:[%s2737_s20 + $0x120] sm:$0xff]  ;;  %v321_v56 = vld [vmem:[%s2737_s20 + $0x128] sm:$0xff]  ;;  %v322_v57 = vld [vmem:[%s2737_s20 + $0x130] sm:$0xff] }
  0x1f   : > { %v323_v58 = vld [vmem:[%s2737_s20 + $0x138] sm:$0xff]  ;;  %v324_v59 = vld [vmem:[%s2737_s20 + $0x140] sm:$0xff]  ;;  %v325_v60 = vld [vmem:[%s2737_s20 + $0x148] sm:$0xff] }
  0x20   : > { %2414 = vmatmul.mubr.msk.f32.gmra.mrb[6].mxu0 %vm359_vm0, %v291_v17  ;;  %v326_v61 = vld [vmem:[%s2737_s20 + $0x150] sm:$0xff]  ;;  %v327_v62 = vld [vmem:[%s2737_s20 + $0x158] sm:$0xff]  ;;  %v328_v63 = vld [vmem:[%s2737_s20 + $0x160] sm:$0xff] }
  0x21   : > { %2416 = vmatprep.mubr.msk.f32.mxu0 %vm359_vm0, %v292_v18  ;;  %2635 = vmatpush3.bf16.msra.mxu0 %v2632_v33  ;;  %v329_v0 = vld [vmem:[%s2737_s20 + $0x168] sm:$0xff]  ;;  %v330_v1 = vld [vmem:[%s2737_s20 + $0x170] sm:$0xff]  ;;  %v331_v2 = vld [vmem:[%s2737_s20 + $0x178] sm:$0xff] }
  0x22   : > { %v332_v3 = vld [vmem:[%s2737_s20 + $0x180] sm:$0xff]  ;;  %v333_v4 = vld [vmem:[%s2737_s20 + $0x188] sm:$0xff]  ;;  %v334_v5 = vld [vmem:[%s2737_s20 + $0x190] sm:$0xff] }
  0x23   : > { %v335_v6 = vld [vmem:[%s2737_s20 + $0x198] sm:$0xff]  ;;  %v336_v7 = vld [vmem:[%s2737_s20 + $0x1a0] sm:$0xff]  ;;  %v337_v8 = vld [vmem:[%s2737_s20 + $0x1a8] sm:$0xff] }
  0x24   : > { %2417 = vmatmul.mubr.msk.f32.gmra.mrb[8].mxu0 %vm359_vm0, %v293_v19  ;;  %v338_v9 = vld [vmem:[%s2737_s20 + $0x1b0] sm:$0xff]  ;;  %v339_v10 = vld [vmem:[%s2737_s20 + $0x1b8] sm:$0xff]  ;;  %v340_v11 = vld [vmem:[%s2737_s20 + $0x1c0] sm:$0xff] }
  0x25   : > { %2419 = vmatprep.mubr.msk.f32.mxu0 %vm359_vm0, %v294_v20  ;;  %v341_v12 = vld [vmem:[%s2737_s20 + $0x1c8] sm:$0xff]  ;;  %v342_v13 = vld [vmem:[%s2737_s20 + $0x1d0] sm:$0xff]  ;;  %v343_v14 = vld [vmem:[%s2737_s20 + $0x1d8] sm:$0xff] }
  0x26   : > { %v344_v15 = vld [vmem:[%s2737_s20 + $0x1e0] sm:$0xff]  ;;  %v345_v16 = vld [vmem:[%s2737_s20 + $0x1e8] sm:$0xff]  ;;  %v346_v17 = vld [vmem:[%s2737_s20 + $0x1f0] sm:$0xff] }
  0x27   : > { %v347_v18 = vld [vmem:[%s2737_s20 + $0x1f8] sm:$0xff]  ;;  %v2888_v19 = vld [vmem:[%s3426_s2] ss:$0 sm:$0xff]  ;;  %s3227_s20 = scalar_lea.vmem %s3431_s7, %s2119_s17 }
  0x28   : > { %2420 = vmatmul.mubr.msk.f32.gmra.mrb[10].mxu0 %vm359_vm0, %v295_v21 }
  0x29   : > { %2422 = vmatprep.mubr.msk.f32.mxu0 %vm359_vm0, %v296_v24 }
  0x2c   : > { %2423 = vmatmul.mubr.msk.f32.gmra.mrb[12].mxu0 %vm359_vm0, %v297_v31 }
  0x2d   : > { %2425 = vmatprep.mubr.msk.f32.mxu0 %vm359_vm0, %v298_v32 }
  0x30   : > { %2426 = vmatmul.mubr.msk.f32.gmra.mrb[14].mxu0 %vm359_vm0, %v299_v34 }
  0x31   : > { %2428 = vmatprep.mubr.msk.f32.mxu0 %vm359_vm0, %v300_v35 }
  0x34   : > { %2429 = vmatmul.mubr.msk.f32.gmra.mrb[16].mxu0 %vm359_vm0, %v301_v36 }
  0x35   : > { %2431 = vmatprep.mubr.msk.f32.mxu0 %vm359_vm0, %v302_v37 }
  0x38   : > { %2432 = vmatmul.mubr.msk.f32.gmra.mrb[18].mxu0 %vm359_vm0, %v303_v38 }
  0x39   : > { %2434 = vmatprep.mubr.msk.f32.mxu0 %vm359_vm0, %v304_v39 }
  0x3c   : > { %2435 = vmatmul.mubr.msk.f32.gmra.mrb[20].mxu0 %vm359_vm0, %v305_v40 }
  0x3d   : > { %2437 = vmatprep.mubr.msk.f32.mxu0 %vm359_vm0, %v306_v41 }
  0x40   : > { %2438 = vmatmul.mubr.msk.f32.gmra.mrb[22].mxu0 %vm359_vm0, %v307_v42 }
  0x41   : > { %2440 = vmatprep.mubr.msk.f32.mxu0 %vm359_vm0, %v308_v43 }
  0x44   : > { %2441 = vmatmul.mubr.msk.f32.gmra.mrb[24].mxu0 %vm359_vm0, %v309_v44 }
  0x45   : > { %2443 = vmatprep.mubr.msk.f32.mxu0 %vm359_vm0, %v310_v45 }
  0x48   : > { %2444 = vmatmul.mubr.msk.f32.gmra.mrb[26].mxu0 %vm359_vm0, %v311_v46 }
  0x49   : > { %2446 = vmatprep.mubr.msk.f32.mxu0 %vm359_vm0, %v312_v47 }
  0x4c   : > { %2447 = vmatmul.mubr.msk.f32.gmra.mrb[28].mxu0 %vm359_vm0, %v313_v48 }
  0x4d   : > { %2449 = vmatprep.mubr.msk.f32.mxu0 %vm359_vm0, %v314_v49 }
  0x50   : > { %2450 = vmatmul.mubr.msk.f32.gmra.mrb[30].mxu0 %vm359_vm0, %v315_v50 }
  0x51   : > { %2452 = vmatprep.mubr.msk.f32.mxu0 %vm359_vm0, %v316_v51 }
  0x54   : > { %2453 = vmatmul.mubr.msk.f32.gmra.mrb[32].mxu0 %vm359_vm0, %v317_v52 }
  0x55   : > { %2455 = vmatprep.mubr.msk.f32.mxu0 %vm359_vm0, %v318_v53 }
  0x58   : > { %2456 = vmatmul.mubr.msk.f32.gmra.mrb[34].mxu0 %vm359_vm0, %v319_v54 }
  0x59   : > { %2458 = vmatprep.mubr.msk.f32.mxu0 %vm359_vm0, %v320_v55 }
  0x5c   : > { %2459 = vmatmul.mubr.msk.f32.gmra.mrb[36].mxu0 %vm359_vm0, %v321_v56 }
  0x5d   : > { %2461 = vmatprep.mubr.msk.f32.mxu0 %vm359_vm0, %v322_v57 }
  0x60   : > { %2462 = vmatmul.mubr.msk.f32.gmra.mrb[38].mxu0 %vm359_vm0, %v323_v58 }
  0x61   : > { %2464 = vmatprep.mubr.msk.f32.mxu0 %vm359_vm0, %v324_v59 }
  0x64   : > { %2465 = vmatmul.mubr.msk.f32.gmra.mrb[40].mxu0 %vm359_vm0, %v325_v60 }
  0x65   : > { %2467 = vmatprep.mubr.msk.f32.mxu0 %vm359_vm0, %v326_v61 }
  0x68   : > { %2468 = vmatmul.mubr.msk.f32.gmra.mrb[42].mxu0 %vm359_vm0, %v327_v62 }
  0x69   : > { %2470 = vmatprep.mubr.msk.f32.mxu0 %vm359_vm0, %v328_v63 }
  0x6c   : > { %2471 = vmatmul.mubr.msk.f32.gmra.mrb[44].mxu0 %vm359_vm0, %v329_v0 }
  0x6d   : > { %2473 = vmatprep.mubr.msk.f32.mxu0 %vm359_vm0, %v330_v1 }
  0x70   : > { %2474 = vmatmul.mubr.msk.f32.gmra.mrb[46].mxu0 %vm359_vm0, %v331_v2 }
  0x71   : > { %2476 = vmatprep.mubr.msk.f32.mxu0 %vm359_vm0, %v332_v3 }
  0x74   : > { %2477 = vmatmul.mubr.msk.f32.gmra.mrb[48].mxu0 %vm359_vm0, %v333_v4 }
  0x75   : > { %2479 = vmatprep.mubr.msk.f32.mxu0 %vm359_vm0, %v334_v5 }
  0x78   : > { %2480 = vmatmul.mubr.msk.f32.gmra.mrb[50].mxu0 %vm359_vm0, %v335_v6 }
  0x79   : > { %2482 = vmatprep.mubr.msk.f32.mxu0 %vm359_vm0, %v336_v7 }
  0x7c   : > { %2483 = vmatmul.mubr.msk.f32.gmra.mrb[52].mxu0 %vm359_vm0, %v337_v8 }
  0x7d   : > { %2485 = vmatprep.mubr.msk.f32.mxu0 %vm359_vm0, %v338_v9 }
  0x80   : > { %2486 = vmatmul.mubr.msk.f32.gmra.mrb[54].mxu0 %vm359_vm0, %v339_v10 }
  0x81   : > { %2488 = vmatprep.mubr.msk.f32.mxu0 %vm359_vm0, %v340_v11 }
  0x84   : > { %2489 = vmatmul.mubr.msk.f32.gmra.mrb[56].mxu0 %vm359_vm0, %v341_v12 }
  0x85   : > { %2491 = vmatprep.mubr.msk.f32.mxu0 %vm359_vm0, %v342_v13 }
  0x88   : > { %2492 = vmatmul.mubr.msk.f32.gmra.mrb[58].mxu0 %vm359_vm0, %v343_v14 }
  0x89   : > { %2494 = vmatprep.mubr.msk.f32.mxu0 %vm359_vm0, %v344_v15 }
  0x8c   : > { %2495 = vmatmul.mubr.msk.f32.gmra.mrb[60].mxu0 %vm359_vm0, %v345_v16 }
  0x8d   : > { %2497 = vmatprep.mubr.msk.f32.mxu0 %vm359_vm0, %v346_v17 }
  0x90   : > { %2498 = vmatmul.mubr.msk.f32.gmra.mrb[62].mxu0 %vm359_vm0, %v347_v18 }
  0xe7   : > { %v2406_v20 = vpop.f32.mrb[0].mxu0 }
  0xe8   : > { %v624_v21 = vadd.f32 %v2406_v20, %v2888_v19  ;;  %v618_v22 = vpop.f32.mrb[1].mxu0 }
  0xe9   : > { %v619_v23 = vadd.f32 %v2888_v19, %v618_v22 }
  0xea   : > { %v938_v26 = vmax.f32 %v624_v21, 0.0 }
  0xeb   : > { %v937_v24 = vmax.f32 %v619_v23, 0.0  ;;  %v2409_v25 = vpop.f32.mrb[2].mxu0 }
  0xec   : > { %v634_v27 = vadd.f32 %v2409_v25, %v2888_v19  ;;  %v628_v28 = vpop.f32.mrb[3].mxu0 }
  0xed   : > { %v629_v29 = vadd.f32 %v2888_v19, %v628_v28  ;;  %2516 = vmatprep.mubr.msk.f32.mxu0 %vm1016_vm1, %v937_v24 }
  0xee   : > { %2517 = vmatmul.mubr.msk.f32.vlgmr.msra.gmra.mrb[64].mxu0 %vm1016_vm1, %v938_v26  ;;  %v940_v32 = vmax.f32 %v634_v27, 0.0 }
  0xef   : > { %v939_v30 = vmax.f32 %v629_v29, 0.0  ;;  %v2412_v31 = vpop.f32.mrb[4].mxu0 }
  0xf0   : > { %v644_v33 = vadd.f32 %v2412_v31, %v2888_v19  ;;  %v638_v34 = vpop.f32.mrb[5].mxu0 }
  0xf1   : > { %v639_v35 = vadd.f32 %v2888_v19, %v638_v34  ;;  %2519 = vmatprep.mubr.msk.f32.mxu1 %vm1016_vm1, %v939_v30 }
  0xf2   : > { %v942_v36 = vmax.f32 %v644_v33, 0.0  ;;  %2520 = vmatmul.mubr.msk.f32.vlgmr.msra.gmra.mrb[0].mxu1 %vm1016_vm1, %v940_v32 }
  0xf3   : > { %v941_v37 = vmax.f32 %v639_v35, 0.0  ;;  %v2415_v38 = vpop.f32.mrb[6].mxu0 }
  0xf4   : > { %v654_v39 = vadd.f32 %v2415_v38, %v2888_v19  ;;  %v648_v40 = vpop.f32.mrb[7].mxu0 }
  0xf5   : > { %v649_v41 = vadd.f32 %v2888_v19, %v648_v40  ;;  %2522 = vmatprep.mubr.msk.f32.mxu1 %vm1016_vm1, %v941_v37 }
  0xf6   : > { %v944_v42 = vmax.f32 %v654_v39, 0.0  ;;  %2523 = vmatmul.mubr.msk.f32.gmra.mrb[2].mxu1 %vm1016_vm1, %v942_v36 }
  0xf7   : > { %v943_v43 = vmax.f32 %v649_v41, 0.0  ;;  %v2418_v44 = vpop.f32.mrb[8].mxu0 }
  0xf8   : > { %v664_v45 = vadd.f32 %v2418_v44, %v2888_v19  ;;  %v658_v46 = vpop.f32.mrb[9].mxu0 }
  0xf9   : > { %v659_v47 = vadd.f32 %v2888_v19, %v658_v46  ;;  %2525 = vmatprep.mubr.msk.f32.mxu1 %vm1016_vm1, %v943_v43 }
  0xfa   : > { %v946_v48 = vmax.f32 %v664_v45, 0.0  ;;  %2526 = vmatmul.mubr.msk.f32.gmra.mrb[4].mxu1 %vm1016_vm1, %v944_v42 }
  0xfb   : > { %v945_v49 = vmax.f32 %v659_v47, 0.0  ;;  %v2421_v50 = vpop.f32.mrb[10].mxu0 }
  0xfc   : > { %v674_v51 = vadd.f32 %v2421_v50, %v2888_v19  ;;  %v668_v52 = vpop.f32.mrb[11].mxu0 }
  0xfd   : > { %v669_v53 = vadd.f32 %v2888_v19, %v668_v52  ;;  %2528 = vmatprep.mubr.msk.f32.mxu1 %vm1016_vm1, %v945_v49 }
  0xfe   : > { %v948_v54 = vmax.f32 %v674_v51, 0.0  ;;  %2529 = vmatmul.mubr.msk.f32.gmra.mrb[6].mxu1 %vm1016_vm1, %v946_v48 }
  0xff   : > { %v947_v55 = vmax.f32 %v669_v53, 0.0  ;;  %v2424_v56 = vpop.f32.mrb[12].mxu0 }
 0x100   : > { %v684_v57 = vadd.f32 %v2424_v56, %v2888_v19  ;;  %v678_v58 = vpop.f32.mrb[13].mxu0 }
 0x101   : > { %v679_v59 = vadd.f32 %v2888_v19, %v678_v58  ;;  %2531 = vmatprep.mubr.msk.f32.mxu1 %vm1016_vm1, %v947_v55 }
 0x102   : > { %v950_v60 = vmax.f32 %v684_v57, 0.0  ;;  %2532 = vmatmul.mubr.msk.f32.gmra.mrb[8].mxu1 %vm1016_vm1, %v948_v54 }
 0x103   : > { %v949_v61 = vmax.f32 %v679_v59, 0.0  ;;  %v2427_v62 = vpop.f32.mrb[14].mxu0 }
 0x104   : > { %v694_v63 = vadd.f32 %v2427_v62, %v2888_v19  ;;  %v688_v0 = vpop.f32.mrb[15].mxu0 }
 0x105   : > { %v689_v1 = vadd.f32 %v2888_v19, %v688_v0  ;;  %2534 = vmatprep.mubr.msk.f32.mxu1 %vm1016_vm1, %v949_v61 }
 0x106   : > { %v952_v2 = vmax.f32 %v694_v63, 0.0  ;;  %2535 = vmatmul.mubr.msk.f32.gmra.mrb[10].mxu1 %vm1016_vm1, %v950_v60 }
 0x107   : > { %v951_v3 = vmax.f32 %v689_v1, 0.0  ;;  %v2430_v4 = vpop.f32.mrb[16].mxu0 }
 0x108   : > { %v704_v5 = vadd.f32 %v2430_v4, %v2888_v19  ;;  %v698_v6 = vpop.f32.mrb[17].mxu0 }
 0x109   : > { %v699_v7 = vadd.f32 %v2888_v19, %v698_v6  ;;  %2537 = vmatprep.mubr.msk.f32.mxu1 %vm1016_vm1, %v951_v3 }
 0x10a   : > { %v954_v8 = vmax.f32 %v704_v5, 0.0  ;;  %2538 = vmatmul.mubr.msk.f32.gmra.mrb[12].mxu1 %vm1016_vm1, %v952_v2 }
 0x10b   : > { %v953_v9 = vmax.f32 %v699_v7, 0.0  ;;  %v2433_v10 = vpop.f32.mrb[18].mxu0 }
 0x10c   : > { %v714_v11 = vadd.f32 %v2433_v10, %v2888_v19  ;;  %v708_v12 = vpop.f32.mrb[19].mxu0 }
 0x10d   : > { %v709_v13 = vadd.f32 %v2888_v19, %v708_v12  ;;  %2540 = vmatprep.mubr.msk.f32.mxu1 %vm1016_vm1, %v953_v9 }
 0x10e   : > { %v956_v14 = vmax.f32 %v714_v11, 0.0  ;;  %2541 = vmatmul.mubr.msk.f32.gmra.mrb[14].mxu1 %vm1016_vm1, %v954_v8 }
 0x10f   : > { %v955_v15 = vmax.f32 %v709_v13, 0.0  ;;  %v2436_v16 = vpop.f32.mrb[20].mxu0 }
 0x110   : > { %v724_v17 = vadd.f32 %v2436_v16, %v2888_v19  ;;  %v718_v18 = vpop.f32.mrb[21].mxu0 }
 0x111   : > { %v719_v20 = vadd.f32 %v2888_v19, %v718_v18  ;;  %2543 = vmatprep.mubr.msk.f32.mxu1 %vm1016_vm1, %v955_v15 }
 0x112   : > { %v958_v21 = vmax.f32 %v724_v17, 0.0  ;;  %2544 = vmatmul.mubr.msk.f32.gmra.mrb[16].mxu1 %vm1016_vm1, %v956_v14 }
 0x113   : > { %v957_v22 = vmax.f32 %v719_v20, 0.0  ;;  %v2439_v23 = vpop.f32.mrb[22].mxu0 }
 0x114   : > { %v734_v24 = vadd.f32 %v2439_v23, %v2888_v19  ;;  %v728_v25 = vpop.f32.mrb[23].mxu0 }
 0x115   : > { %v729_v26 = vadd.f32 %v2888_v19, %v728_v25  ;;  %2546 = vmatprep.mubr.msk.f32.mxu1 %vm1016_vm1, %v957_v22 }
 0x116   : > { %v960_v27 = vmax.f32 %v734_v24, 0.0  ;;  %2547 = vmatmul.mubr.msk.f32.gmra.mrb[18].mxu1 %vm1016_vm1, %v958_v21 }
 0x117   : > { %v959_v28 = vmax.f32 %v729_v26, 0.0  ;;  %v2442_v29 = vpop.f32.mrb[24].mxu0 }
 0x118   : > { %v744_v30 = vadd.f32 %v2442_v29, %v2888_v19  ;;  %v738_v31 = vpop.f32.mrb[25].mxu0 }
 0x119   : > { %v739_v32 = vadd.f32 %v2888_v19, %v738_v31  ;;  %2549 = vmatprep.mubr.msk.f32.mxu1 %vm1016_vm1, %v959_v28 }
 0x11a   : > { %v962_v33 = vmax.f32 %v744_v30, 0.0  ;;  %2550 = vmatmul.mubr.msk.f32.gmra.mrb[20].mxu1 %vm1016_vm1, %v960_v27 }
 0x11b   : > { %v961_v34 = vmax.f32 %v739_v32, 0.0  ;;  %v2445_v35 = vpop.f32.mrb[26].mxu0 }
 0x11c   : > { %v754_v36 = vadd.f32 %v2445_v35, %v2888_v19  ;;  %v748_v37 = vpop.f32.mrb[27].mxu0 }
 0x11d   : > { %v749_v38 = vadd.f32 %v2888_v19, %v748_v37  ;;  %2552 = vmatprep.mubr.msk.f32.mxu1 %vm1016_vm1, %v961_v34 }
 0x11e   : > { %v964_v39 = vmax.f32 %v754_v36, 0.0  ;;  %2553 = vmatmul.mubr.msk.f32.gmra.mrb[22].mxu1 %vm1016_vm1, %v962_v33 }
 0x11f   : > { %v963_v40 = vmax.f32 %v749_v38, 0.0  ;;  %v2448_v41 = vpop.f32.mrb[28].mxu0 }
 0x120   : > { %v764_v42 = vadd.f32 %v2448_v41, %v2888_v19  ;;  %v758_v43 = vpop.f32.mrb[29].mxu0 }
 0x121   : > { %v759_v44 = vadd.f32 %v2888_v19, %v758_v43  ;;  %2555 = vmatprep.mubr.msk.f32.mxu1 %vm1016_vm1, %v963_v40 }
 0x122   : > { %v966_v45 = vmax.f32 %v764_v42, 0.0  ;;  %2556 = vmatmul.mubr.msk.f32.gmra.mrb[24].mxu1 %vm1016_vm1, %v964_v39 }
 0x123   : > { %v965_v46 = vmax.f32 %v759_v44, 0.0  ;;  %v2451_v47 = vpop.f32.mrb[30].mxu0 }
 0x124   : > { %v774_v48 = vadd.f32 %v2451_v47, %v2888_v19  ;;  %v768_v49 = vpop.f32.mrb[31].mxu0 }
 0x125   : > { %v769_v50 = vadd.f32 %v2888_v19, %v768_v49  ;;  %2558 = vmatprep.mubr.msk.f32.mxu1 %vm1016_vm1, %v965_v46 }
 0x126   : > { %v968_v51 = vmax.f32 %v774_v48, 0.0  ;;  %2559 = vmatmul.mubr.msk.f32.gmra.mrb[26].mxu1 %vm1016_vm1, %v966_v45 }
 0x127   : > { %v967_v52 = vmax.f32 %v769_v50, 0.0  ;;  %v2454_v53 = vpop.f32.mrb[32].mxu0 }
 0x128   : > { %v784_v54 = vadd.f32 %v2454_v53, %v2888_v19  ;;  %v778_v55 = vpop.f32.mrb[33].mxu0 }
 0x129   : > { %v779_v56 = vadd.f32 %v2888_v19, %v778_v55  ;;  %2561 = vmatprep.mubr.msk.f32.mxu1 %vm1016_vm1, %v967_v52 }
 0x12a   : > { %v970_v57 = vmax.f32 %v784_v54, 0.0  ;;  %2562 = vmatmul.mubr.msk.f32.gmra.mrb[28].mxu1 %vm1016_vm1, %v968_v51 }
 0x12b   : > { %v969_v58 = vmax.f32 %v779_v56, 0.0  ;;  %v2457_v59 = vpop.f32.mrb[34].mxu0 }
 0x12c   : > { %v794_v60 = vadd.f32 %v2457_v59, %v2888_v19  ;;  %v788_v61 = vpop.f32.mrb[35].mxu0 }
 0x12d   : > { %v789_v62 = vadd.f32 %v2888_v19, %v788_v61  ;;  %2564 = vmatprep.mubr.msk.f32.mxu1 %vm1016_vm1, %v969_v58 }
 0x12e   : > { %v972_v63 = vmax.f32 %v794_v60, 0.0  ;;  %2565 = vmatmul.mubr.msk.f32.gmra.mrb[30].mxu1 %vm1016_vm1, %v970_v57 }
 0x12f   : > { %v971_v0 = vmax.f32 %v789_v62, 0.0  ;;  %v2460_v1 = vpop.f32.mrb[36].mxu0 }
 0x130   : > { %v804_v2 = vadd.f32 %v2460_v1, %v2888_v19  ;;  %v798_v3 = vpop.f32.mrb[37].mxu0 }
 0x131   : > { %v799_v4 = vadd.f32 %v2888_v19, %v798_v3  ;;  %2567 = vmatprep.mubr.msk.f32.mxu1 %vm1016_vm1, %v971_v0 }
 0x132   : > { %v974_v5 = vmax.f32 %v804_v2, 0.0  ;;  %2568 = vmatmul.mubr.msk.f32.gmra.mrb[32].mxu1 %vm1016_vm1, %v972_v63 }
 0x133   : > { %v973_v6 = vmax.f32 %v799_v4, 0.0  ;;  %v2463_v7 = vpop.f32.mrb[38].mxu0 }
 0x134   : > { %v814_v8 = vadd.f32 %v2463_v7, %v2888_v19  ;;  %v808_v9 = vpop.f32.mrb[39].mxu0 }
 0x135   : > { %v809_v10 = vadd.f32 %v2888_v19, %v808_v9  ;;  %2570 = vmatprep.mubr.msk.f32.mxu1 %vm1016_vm1, %v973_v6 }
 0x136   : > { %v976_v11 = vmax.f32 %v814_v8, 0.0  ;;  %2571 = vmatmul.mubr.msk.f32.gmra.mrb[34].mxu1 %vm1016_vm1, %v974_v5 }
 0x137   : > { %v975_v12 = vmax.f32 %v809_v10, 0.0  ;;  %v2466_v13 = vpop.f32.mrb[40].mxu0 }
 0x138   : > { %v824_v14 = vadd.f32 %v2466_v13, %v2888_v19  ;;  %v818_v15 = vpop.f32.mrb[41].mxu0 }
 0x139   : > { %v819_v16 = vadd.f32 %v2888_v19, %v818_v15  ;;  %2573 = vmatprep.mubr.msk.f32.mxu1 %vm1016_vm1, %v975_v12 }
 0x13a   : > { %v978_v17 = vmax.f32 %v824_v14, 0.0  ;;  %2574 = vmatmul.mubr.msk.f32.gmra.mrb[36].mxu1 %vm1016_vm1, %v976_v11 }
 0x13b   : > { %v977_v18 = vmax.f32 %v819_v16, 0.0  ;;  %v2469_v20 = vpop.f32.mrb[42].mxu0 }
 0x13c   : > { %v834_v21 = vadd.f32 %v2469_v20, %v2888_v19  ;;  %v828_v22 = vpop.f32.mrb[43].mxu0 }
 0x13d   : > { %v829_v23 = vadd.f32 %v2888_v19, %v828_v22  ;;  %2576 = vmatprep.mubr.msk.f32.mxu1 %vm1016_vm1, %v977_v18 }
 0x13e   : > { %v980_v24 = vmax.f32 %v834_v21, 0.0  ;;  %2577 = vmatmul.mubr.msk.f32.gmra.mrb[38].mxu1 %vm1016_vm1, %v978_v17 }
 0x13f   : > { %v979_v25 = vmax.f32 %v829_v23, 0.0  ;;  %v2472_v26 = vpop.f32.mrb[44].mxu0  ;;  %v3021_v23 = vld [vmem:[%s3428_s4] ss:$0 sm:$0xff] }
 0x140   : > { %v844_v27 = vadd.f32 %v2472_v26, %v2888_v19  ;;  %v838_v28 = vpop.f32.mrb[45].mxu0 }
 0x141   : > { %v839_v29 = vadd.f32 %v2888_v19, %v838_v28  ;;  %2579 = vmatprep.mubr.msk.f32.mxu1 %vm1016_vm1, %v979_v25 }
 0x142   : > { %v982_v30 = vmax.f32 %v844_v27, 0.0  ;;  %2580 = vmatmul.mubr.msk.f32.gmra.mrb[40].mxu1 %vm1016_vm1, %v980_v24  ;;  %v3028_v27 = vld [vmem:[%s3429_s5] ss:$0 sm:$0xff] }
 0x143   : > { %v981_v31 = vmax.f32 %v839_v29, 0.0  ;;  %v2475_v32 = vpop.f32.mrb[46].mxu0 }
 0x144   : > { %v854_v33 = vadd.f32 %v2475_v32, %v2888_v19  ;;  %v848_v34 = vpop.f32.mrb[47].mxu0 }
 0x145   : > { %v849_v35 = vadd.f32 %v2888_v19, %v848_v34  ;;  %2582 = vmatprep.mubr.msk.f32.mxu1 %vm1016_vm1, %v981_v31 }
 0x146   : > { %v984_v36 = vmax.f32 %v854_v33, 0.0  ;;  %2583 = vmatmul.mubr.msk.f32.gmra.mrb[42].mxu1 %vm1016_vm1, %v982_v30 }
 0x147   : > { %v983_v37 = vmax.f32 %v849_v35, 0.0  ;;  %v2478_v38 = vpop.f32.mrb[48].mxu0 }
 0x148   : > { %v864_v39 = vadd.f32 %v2478_v38, %v2888_v19  ;;  %v858_v40 = vpop.f32.mrb[49].mxu0 }
 0x149   : > { %v859_v41 = vadd.f32 %v2888_v19, %v858_v40  ;;  %2585 = vmatprep.mubr.msk.f32.mxu1 %vm1016_vm1, %v983_v37 }
 0x14a   : > { %v986_v42 = vmax.f32 %v864_v39, 0.0  ;;  %2586 = vmatmul.mubr.msk.f32.gmra.mrb[44].mxu1 %vm1016_vm1, %v984_v36 }
 0x14b   : > { %v985_v43 = vmax.f32 %v859_v41, 0.0  ;;  %v2481_v44 = vpop.f32.mrb[50].mxu0 }
 0x14c   : > { %v874_v45 = vadd.f32 %v2481_v44, %v2888_v19  ;;  %v868_v46 = vpop.f32.mrb[51].mxu0 }
 0x14d   : > { %v869_v47 = vadd.f32 %v2888_v19, %v868_v46  ;;  %2588 = vmatprep.mubr.msk.f32.mxu1 %vm1016_vm1, %v985_v43 }
 0x14e   : > { %v988_v48 = vmax.f32 %v874_v45, 0.0  ;;  %2589 = vmatmul.mubr.msk.f32.gmra.mrb[46].mxu1 %vm1016_vm1, %v986_v42 }
 0x14f   : > { %v987_v49 = vmax.f32 %v869_v47, 0.0  ;;  %v2484_v50 = vpop.f32.mrb[52].mxu0 }
 0x150   : > { %v884_v51 = vadd.f32 %v2484_v50, %v2888_v19  ;;  %v878_v52 = vpop.f32.mrb[53].mxu0 }
 0x151   : > { %v879_v53 = vadd.f32 %v2888_v19, %v878_v52  ;;  %2591 = vmatprep.mubr.msk.f32.mxu1 %vm1016_vm1, %v987_v49 }
 0x152   : > { %v990_v54 = vmax.f32 %v884_v51, 0.0  ;;  %2592 = vmatmul.mubr.msk.f32.gmra.mrb[48].mxu1 %vm1016_vm1, %v988_v48 }
 0x153   : > { %v989_v55 = vmax.f32 %v879_v53, 0.0  ;;  %v2487_v56 = vpop.f32.mrb[54].mxu0 }
 0x154   : > { %v894_v57 = vadd.f32 %v2487_v56, %v2888_v19  ;;  %v888_v58 = vpop.f32.mrb[55].mxu0 }
 0x155   : > { %v889_v59 = vadd.f32 %v2888_v19, %v888_v58  ;;  %2594 = vmatprep.mubr.msk.f32.mxu1 %vm1016_vm1, %v989_v55 }
 0x156   : > { %v992_v60 = vmax.f32 %v894_v57, 0.0  ;;  %2595 = vmatmul.mubr.msk.f32.gmra.mrb[50].mxu1 %vm1016_vm1, %v990_v54 }
 0x157   : > { %v991_v61 = vmax.f32 %v889_v59, 0.0  ;;  %v2490_v62 = vpop.f32.mrb[56].mxu0 }
 0x158   : > { %v904_v63 = vadd.f32 %v2490_v62, %v2888_v19  ;;  %v898_v0 = vpop.f32.mrb[57].mxu0 }
 0x159   : > { %v899_v1 = vadd.f32 %v2888_v19, %v898_v0  ;;  %2597 = vmatprep.mubr.msk.f32.mxu1 %vm1016_vm1, %v991_v61 }
 0x15a   : > { %v994_v2 = vmax.f32 %v904_v63, 0.0  ;;  %2598 = vmatmul.mubr.msk.f32.gmra.mrb[52].mxu1 %vm1016_vm1, %v992_v60 }
 0x15b   : > { %v993_v3 = vmax.f32 %v899_v1, 0.0  ;;  %v2493_v4 = vpop.f32.mrb[58].mxu0 }
 0x15c   : > { %v914_v5 = vadd.f32 %v2493_v4, %v2888_v19  ;;  %v908_v6 = vpop.f32.mrb[59].mxu0 }
 0x15d   : > { %v909_v7 = vadd.f32 %v2888_v19, %v908_v6  ;;  %2600 = vmatprep.mubr.msk.f32.mxu1 %vm1016_vm1, %v993_v3 }
 0x15e   : > { %v996_v8 = vmax.f32 %v914_v5, 0.0  ;;  %2601 = vmatmul.mubr.msk.f32.gmra.mrb[54].mxu1 %vm1016_vm1, %v994_v2 }
 0x15f   : > { %v995_v9 = vmax.f32 %v909_v7, 0.0  ;;  %v2496_v10 = vpop.f32.mrb[60].mxu0 }
 0x160   : > { %v924_v11 = vadd.f32 %v2496_v10, %v2888_v19  ;;  %v918_v12 = vpop.f32.mrb[61].mxu0 }
 0x161   : > { %v919_v13 = vadd.f32 %v2888_v19, %v918_v12  ;;  %2603 = vmatprep.mubr.msk.f32.mxu1 %vm1016_vm1, %v995_v9 }
 0x162   : > { %v998_v14 = vmax.f32 %v924_v11, 0.0  ;;  %2604 = vmatmul.mubr.msk.f32.gmra.mrb[56].mxu1 %vm1016_vm1, %v996_v8 }
 0x163   : > { %v997_v15 = vmax.f32 %v919_v13, 0.0  ;;  %v2499_v16 = vpop.f32.mrb[62].mxu0 }
 0x164   : > { %v934_v17 = vadd.f32 %v2499_v16, %v2888_v19  ;;  %v928_v18 = vpop.f32.mrb[63].mxu0 }
 0x165   : > { %v929_v20 = vadd.f32 %v2888_v19, %v928_v18  ;;  %2606 = vmatprep.mubr.msk.f32.mxu1 %vm1016_vm1, %v997_v15 }
 0x166   : > { %v1000_v21 = vmax.f32 %v934_v17, 0.0  ;;  %2607 = vmatmul.mubr.msk.f32.gmra.mrb[58].mxu1 %vm1016_vm1, %v998_v14 }
 0x167   : > { %v999_v22 = vmax.f32 %v929_v20, 0.0 }
 0x169   : > { %2609 = vmatprep.mubr.msk.f32.mxu1 %vm1016_vm1, %v999_v22 }
 0x16a   : > { %2610 = vmatmul.mubr.msk.f32.gmra.mrb[60].mxu1 %vm1016_vm1, %v1000_v21 }
 0x1c1   : > { %v2518_v24 = vpop.f32.mrb[64].mxu0 }
 0x1c2   : > { %v1281_v25 = vadd.f32 %v2518_v24, %v3021_v23  ;;  %v1275_v26 = vpop.f32.mrb[65].mxu0 }
 0x1c3   : > { %v1276_v19 = vadd.f32 %v3021_v23, %v1275_v26 }
 0x1c4   : > { %v1595_v28 = vmax.f32 %v1281_v25, 0.0 }
 0x1c5   : > { %v1594_v29 = vmax.f32 %v1276_v19, 0.0  ;;  %v2521_v30 = vpop.f32.mrb[0].mxu1 }
 0x1c6   : > { %v1291_v31 = vadd.f32 %v2521_v30, %v3021_v23  ;;  %v1285_v32 = vpop.f32.mrb[1].mxu1  ;;  %v1666_v33 = vmul.f32 %v3028_v27, %v1595_v28 }
 0x1c7   : > { %v1286_v34 = vadd.f32 %v3021_v23, %v1285_v32  ;;  %v1665_v37 = vmul.f32 %v3028_v27, %v1594_v29 }
 0x1c8   : > { %v1597_v35 = vmax.f32 %v1291_v31, 0.0  ;;  %v1732_v36 = vsel %vm359_vm0, %v1666_v33, 0.0 }
 0x1c9   : > { %v1596_v38 = vmax.f32 %v1286_v34, 0.0  ;;  %v2524_v39 = vpop.f32.mrb[2].mxu1  ;;  %1733 = vadd.xlane.f32.xlu0 %v1732_v36  ;;  %v1729_v46 = vsel %vm359_vm0, %v1665_v37, 0.0 }
 0x1ca   : > { %v1301_v40 = vadd.f32 %v2524_v39, %v3021_v23  ;;  %v1295_v41 = vpop.f32.mrb[3].mxu1  ;;  %v1668_v42 = vmul.f32 %v3028_v27, %v1597_v35 }
 0x1cb   : > { %v1296_v43 = vadd.f32 %v3021_v23, %v1295_v41  ;;  %v1667_v47 = vmul.f32 %v3028_v27, %v1596_v38 }
 0x1cc   : > { %v1599_v44 = vmax.f32 %v1301_v40, 0.0  ;;  %v1738_v45 = vsel %vm359_vm0, %v1668_v42, 0.0 }
 0x1cd   : > { %v1598_v48 = vmax.f32 %v1296_v43, 0.0  ;;  %1739 = vadd.xlane.f32.xlu1 %v1738_v45  ;;  %v2527_v49 = vpop.f32.mrb[4].mxu1  ;;  %1730 = vadd.xlane.f32.xlu0 %v1729_v46  ;;  %v1735_v55 = vsel %vm359_vm0, %v1667_v47, 0.0 }
 0x1ce   : > { %v1311_v50 = vadd.f32 %v2527_v49, %v3021_v23  ;;  %v1305_v51 = vpop.f32.mrb[5].mxu1  ;;  %v1670_v56 = vmul.f32 %v3028_v27, %v1599_v44 }
 0x1cf   : > { %v1306_v52 = vadd.f32 %v3021_v23, %v1305_v51  ;;  %v1669_v53 = vmul.f32 %v3028_v27, %v1598_v48 }
 0x1d0   : > { %v1601_v54 = vmax.f32 %v1311_v50, 0.0  ;;  %v1744_v1 = vsel %vm359_vm0, %v1670_v56, 0.0 }
 0x1d1   : > { %v1600_v57 = vmax.f32 %v1306_v52, 0.0  ;;  %v2530_v58 = vpop.f32.mrb[6].mxu1  ;;  %1736 = vadd.xlane.f32.xlu1 %v1735_v55  ;;  %v1741_v59 = vsel %vm359_vm0, %v1669_v53, 0.0 }
 0x1d2   : > { %v1321_v60 = vadd.f32 %v2530_v58, %v3021_v23  ;;  %v1315_v61 = vpop.f32.mrb[7].mxu1  ;;  %1742 = vadd.xlane.f32.xlu0 %v1741_v59  ;;  %v1672_v2 = vmul.f32 %v3028_v27, %v1601_v54 }
 0x1d3   : > { %v1316_v62 = vadd.f32 %v3021_v23, %v1315_v61  ;;  %v1671_v63 = vmul.f32 %v3028_v27, %v1600_v57 }
 0x1d4   : > { %v1603_v0 = vmax.f32 %v1321_v60, 0.0  ;;  %v1750_v11 = vsel %vm359_vm0, %v1672_v2, 0.0 }
 0x1d5   : > { %v1602_v3 = vmax.f32 %v1316_v62, 0.0  ;;  %v2533_v4 = vpop.f32.mrb[8].mxu1  ;;  %1745 = vadd.xlane.f32.xlu1 %v1744_v1  ;;  %v1747_v5 = vsel %vm359_vm0, %v1671_v63, 0.0 }
 0x1d6   : > { %v1331_v6 = vadd.f32 %v2533_v4, %v3021_v23  ;;  %v1325_v7 = vpop.f32.mrb[9].mxu1  ;;  %1748 = vadd.xlane.f32.xlu0 %v1747_v5  ;;  %v1674_v12 = vmul.f32 %v3028_v27, %v1603_v0 }
 0x1d7   : > { %v1326_v8 = vadd.f32 %v3021_v23, %v1325_v7  ;;  %v1673_v9 = vmul.f32 %v3028_v27, %v1602_v3 }
 0x1d8   : > { %v1605_v10 = vmax.f32 %v1331_v6, 0.0  ;;  %v1756_v22 = vsel %vm359_vm0, %v1674_v12, 0.0 }
 0x1d9   : > { %v1604_v13 = vmax.f32 %v1326_v8, 0.0  ;;  %v2536_v14 = vpop.f32.mrb[10].mxu1  ;;  %1751 = vadd.xlane.f32.xlu1 %v1750_v11  ;;  %v1753_v15 = vsel %vm359_vm0, %v1673_v9, 0.0 }
 0x1da   : > { %v1341_v16 = vadd.f32 %v2536_v14, %v3021_v23  ;;  %v1335_v17 = vpop.f32.mrb[11].mxu1  ;;  %1754 = vadd.xlane.f32.xlu0 %v1753_v15  ;;  %v1676_v24 = vmul.f32 %v3028_v27, %v1605_v10 }
 0x1db   : > { %v1336_v18 = vadd.f32 %v3021_v23, %v1335_v17  ;;  %v1675_v20 = vmul.f32 %v3028_v27, %v1604_v13 }
 0x1dc   : > { %v1607_v21 = vmax.f32 %v1341_v16, 0.0  ;;  %v1762_v33 = vsel %vm359_vm0, %v1676_v24, 0.0 }
 0x1dd   : > { %v1606_v25 = vmax.f32 %v1336_v18, 0.0  ;;  %v2539_v26 = vpop.f32.mrb[12].mxu1  ;;  %1757 = vadd.xlane.f32.xlu1 %v1756_v22  ;;  %v1759_v19 = vsel %vm359_vm0, %v1675_v20, 0.0 }
 0x1de   : > { %v1351_v28 = vadd.f32 %v2539_v26, %v3021_v23  ;;  %v1345_v29 = vpop.f32.mrb[13].mxu1  ;;  %1760 = vadd.xlane.f32.xlu0 %v1759_v19  ;;  %v1678_v34 = vmul.f32 %v3028_v27, %v1607_v21 }
 0x1df   : > { %v1346_v30 = vadd.f32 %v3021_v23, %v1345_v29  ;;  %v1677_v31 = vmul.f32 %v3028_v27, %v1606_v25 }
 0x1e0   : > { %v1609_v32 = vmax.f32 %v1351_v28, 0.0  ;;  %v1768_v43 = vsel %vm359_vm0, %v1678_v34, 0.0 }
 0x1e1   : > { %v1608_v35 = vmax.f32 %v1346_v30, 0.0  ;;  %v2542_v36 = vpop.f32.mrb[14].mxu1  ;;  %1763 = vadd.xlane.f32.xlu1 %v1762_v33  ;;  %v1765_v37 = vsel %vm359_vm0, %v1677_v31, 0.0 }
 0x1e2   : > { %v1361_v38 = vadd.f32 %v2542_v36, %v3021_v23  ;;  %v1355_v39 = vpop.f32.mrb[15].mxu1  ;;  %1766 = vadd.xlane.f32.xlu0 %v1765_v37  ;;  %v1680_v44 = vmul.f32 %v3028_v27, %v1609_v32 }
 0x1e3   : > { %v1356_v40 = vadd.f32 %v3021_v23, %v1355_v39  ;;  %v1679_v41 = vmul.f32 %v3028_v27, %v1608_v35 }
 0x1e4   : > { %v1611_v42 = vmax.f32 %v1361_v38, 0.0  ;;  %v1774_v53 = vsel %vm359_vm0, %v1680_v44, 0.0 }
 0x1e5   : > { %v1610_v45 = vmax.f32 %v1356_v40, 0.0  ;;  %v2545_v46 = vpop.f32.mrb[16].mxu1  ;;  %1769 = vadd.xlane.f32.xlu1 %v1768_v43  ;;  %v1771_v47 = vsel %vm359_vm0, %v1679_v41, 0.0 }
 0x1e6   : > { %v1371_v48 = vadd.f32 %v2545_v46, %v3021_v23  ;;  %v1365_v49 = vpop.f32.mrb[17].mxu1  ;;  %1772 = vadd.xlane.f32.xlu0 %v1771_v47  ;;  %v1682_v54 = vmul.f32 %v3028_v27, %v1611_v42 }
 0x1e7   : > { %v1366_v50 = vadd.f32 %v3021_v23, %v1365_v49  ;;  %v1681_v51 = vmul.f32 %v3028_v27, %v1610_v45 }
 0x1e8   : > { %v1613_v52 = vmax.f32 %v1371_v48, 0.0  ;;  %v1780_v63 = vsel %vm359_vm0, %v1682_v54, 0.0 }
 0x1e9   : > { %v1612_v55 = vmax.f32 %v1366_v50, 0.0  ;;  %v2548_v56 = vpop.f32.mrb[18].mxu1  ;;  %1775 = vadd.xlane.f32.xlu1 %v1774_v53  ;;  %v1777_v57 = vsel %vm359_vm0, %v1681_v51, 0.0 }
 0x1ea   : > { %v1381_v58 = vadd.f32 %v2548_v56, %v3021_v23  ;;  %v1375_v59 = vpop.f32.mrb[19].mxu1  ;;  %1778 = vadd.xlane.f32.xlu0 %v1777_v57  ;;  %v1684_v0 = vmul.f32 %v3028_v27, %v1613_v52 }
 0x1eb   : > { %v1376_v60 = vadd.f32 %v3021_v23, %v1375_v59  ;;  %v1683_v61 = vmul.f32 %v3028_v27, %v1612_v55 }
 0x1ec   : > { %v1615_v62 = vmax.f32 %v1381_v58, 0.0  ;;  %v1786_v9 = vsel %vm359_vm0, %v1684_v0, 0.0 }
 0x1ed   : > { %v1614_v1 = vmax.f32 %v1376_v60, 0.0  ;;  %v2551_v2 = vpop.f32.mrb[20].mxu1  ;;  %1781 = vadd.xlane.f32.xlu1 %v1780_v63  ;;  %v1783_v3 = vsel %vm359_vm0, %v1683_v61, 0.0 }
 0x1ee   : > { %v1391_v4 = vadd.f32 %v2551_v2, %v3021_v23  ;;  %v1385_v5 = vpop.f32.mrb[21].mxu1  ;;  %1784 = vadd.xlane.f32.xlu0 %v1783_v3  ;;  %v1686_v10 = vmul.f32 %v3028_v27, %v1615_v62 }
 0x1ef   : > { %v1386_v6 = vadd.f32 %v3021_v23, %v1385_v5  ;;  %v1685_v7 = vmul.f32 %v3028_v27, %v1614_v1 }
 0x1f0   : > { %v1617_v8 = vmax.f32 %v1391_v4, 0.0  ;;  %v1792_v20 = vsel %vm359_vm0, %v1686_v10, 0.0 }
 0x1f1   : > { %v1616_v11 = vmax.f32 %v1386_v6, 0.0  ;;  %v2554_v12 = vpop.f32.mrb[22].mxu1  ;;  %1787 = vadd.xlane.f32.xlu1 %v1786_v9  ;;  %v1789_v13 = vsel %vm359_vm0, %v1685_v7, 0.0 }
 0x1f2   : > { %v1401_v14 = vadd.f32 %v2554_v12, %v3021_v23  ;;  %v1395_v15 = vpop.f32.mrb[23].mxu1  ;;  %1790 = vadd.xlane.f32.xlu0 %v1789_v13  ;;  %v1688_v21 = vmul.f32 %v3028_v27, %v1617_v8 }
 0x1f3   : > { %v1396_v16 = vadd.f32 %v3021_v23, %v1395_v15  ;;  %v1687_v17 = vmul.f32 %v3028_v27, %v1616_v11 }
 0x1f4   : > { %v1619_v18 = vmax.f32 %v1401_v14, 0.0  ;;  %v1798_v31 = vsel %vm359_vm0, %v1688_v21, 0.0 }
 0x1f5   : > { %v1618_v22 = vmax.f32 %v1396_v16, 0.0  ;;  %v2557_v24 = vpop.f32.mrb[24].mxu1  ;;  %1793 = vadd.xlane.f32.xlu1 %v1792_v20  ;;  %v1795_v25 = vsel %vm359_vm0, %v1687_v17, 0.0 }
 0x1f6   : > { %v1411_v26 = vadd.f32 %v2557_v24, %v3021_v23  ;;  %v1405_v19 = vpop.f32.mrb[25].mxu1  ;;  %1796 = vadd.xlane.f32.xlu0 %v1795_v25  ;;  %v1690_v32 = vmul.f32 %v3028_v27, %v1619_v18 }
 0x1f7   : > { %v1406_v28 = vadd.f32 %v3021_v23, %v1405_v19  ;;  %v1689_v29 = vmul.f32 %v3028_v27, %v1618_v22 }
 0x1f8   : > { %v1621_v30 = vmax.f32 %v1411_v26, 0.0  ;;  %v1804_v41 = vsel %vm359_vm0, %v1690_v32, 0.0 }
 0x1f9   : > { %v1620_v33 = vmax.f32 %v1406_v28, 0.0  ;;  %v2560_v34 = vpop.f32.mrb[26].mxu1  ;;  %1799 = vadd.xlane.f32.xlu1 %v1798_v31  ;;  %v1801_v35 = vsel %vm359_vm0, %v1689_v29, 0.0 }
 0x1fa   : > { %v1421_v36 = vadd.f32 %v2560_v34, %v3021_v23  ;;  %v1415_v37 = vpop.f32.mrb[27].mxu1  ;;  %1802 = vadd.xlane.f32.xlu0 %v1801_v35  ;;  %v1692_v42 = vmul.f32 %v3028_v27, %v1621_v30 }
 0x1fb   : > { %v1416_v38 = vadd.f32 %v3021_v23, %v1415_v37  ;;  %v1691_v39 = vmul.f32 %v3028_v27, %v1620_v33 }
 0x1fc   : > { %v1623_v40 = vmax.f32 %v1421_v36, 0.0  ;;  %v1810_v51 = vsel %vm359_vm0, %v1692_v42, 0.0 }
 0x1fd   : > { %v1622_v43 = vmax.f32 %v1416_v38, 0.0  ;;  %v2563_v44 = vpop.f32.mrb[28].mxu1  ;;  %1805 = vadd.xlane.f32.xlu1 %v1804_v41  ;;  %v1807_v45 = vsel %vm359_vm0, %v1691_v39, 0.0 }
 0x1fe   : > { %v1431_v46 = vadd.f32 %v2563_v44, %v3021_v23  ;;  %v1425_v47 = vpop.f32.mrb[29].mxu1  ;;  %1808 = vadd.xlane.f32.xlu0 %v1807_v45  ;;  %v1694_v52 = vmul.f32 %v3028_v27, %v1623_v40 }
 0x1ff   : > { %v1426_v48 = vadd.f32 %v3021_v23, %v1425_v47  ;;  %v1693_v49 = vmul.f32 %v3028_v27, %v1622_v43 }
 0x200   : > { %v1625_v50 = vmax.f32 %v1431_v46, 0.0  ;;  %v1816_v61 = vsel %vm359_vm0, %v1694_v52, 0.0 }
 0x201   : > { %v1624_v53 = vmax.f32 %v1426_v48, 0.0  ;;  %v2566_v54 = vpop.f32.mrb[30].mxu1  ;;  %1811 = vadd.xlane.f32.xlu1 %v1810_v51  ;;  %v1813_v55 = vsel %vm359_vm0, %v1693_v49, 0.0 }
 0x202   : > { %v1441_v56 = vadd.f32 %v2566_v54, %v3021_v23  ;;  %v1435_v57 = vpop.f32.mrb[31].mxu1  ;;  %1814 = vadd.xlane.f32.xlu0 %v1813_v55  ;;  %v1696_v62 = vmul.f32 %v3028_v27, %v1625_v50 }
 0x203   : > { %v1436_v58 = vadd.f32 %v3021_v23, %v1435_v57  ;;  %v1695_v59 = vmul.f32 %v3028_v27, %v1624_v53 }
 0x204   : > { %v1627_v60 = vmax.f32 %v1441_v56, 0.0  ;;  %v1822_v7 = vsel %vm359_vm0, %v1696_v62, 0.0 }
 0x205   : > { %v1626_v63 = vmax.f32 %v1436_v58, 0.0  ;;  %v2569_v0 = vpop.f32.mrb[32].mxu1  ;;  %1817 = vadd.xlane.f32.xlu1 %v1816_v61  ;;  %v1819_v1 = vsel %vm359_vm0, %v1695_v59, 0.0 }
 0x206   : > { %v1451_v2 = vadd.f32 %v2569_v0, %v3021_v23  ;;  %v1445_v3 = vpop.f32.mrb[33].mxu1  ;;  %1820 = vadd.xlane.f32.xlu0 %v1819_v1  ;;  %v1698_v8 = vmul.f32 %v3028_v27, %v1627_v60 }
 0x207   : > { %v1446_v4 = vadd.f32 %v3021_v23, %v1445_v3  ;;  %v1697_v5 = vmul.f32 %v3028_v27, %v1626_v63 }
 0x208   : > { %v1629_v6 = vmax.f32 %v1451_v2, 0.0  ;;  %v1828_v17 = vsel %vm359_vm0, %v1698_v8, 0.0 }
 0x209   : > { %v1628_v9 = vmax.f32 %v1446_v4, 0.0  ;;  %v2572_v10 = vpop.f32.mrb[34].mxu1  ;;  %1823 = vadd.xlane.f32.xlu1 %v1822_v7  ;;  %v1825_v11 = vsel %vm359_vm0, %v1697_v5, 0.0 }
 0x20a   : > { %v1461_v12 = vadd.f32 %v2572_v10, %v3021_v23  ;;  %v1455_v13 = vpop.f32.mrb[35].mxu1  ;;  %1826 = vadd.xlane.f32.xlu0 %v1825_v11  ;;  %v1700_v18 = vmul.f32 %v3028_v27, %v1629_v6 }
 0x20b   : > { %v1456_v14 = vadd.f32 %v3021_v23, %v1455_v13  ;;  %v1699_v15 = vmul.f32 %v3028_v27, %v1628_v9 }
 0x20c   : > { %v1631_v16 = vmax.f32 %v1461_v12, 0.0  ;;  %v1834_v29 = vsel %vm359_vm0, %v1700_v18, 0.0 }
 0x20d   : > { %v1630_v20 = vmax.f32 %v1456_v14, 0.0  ;;  %v2575_v21 = vpop.f32.mrb[36].mxu1  ;;  %1829 = vadd.xlane.f32.xlu1 %v1828_v17  ;;  %v1831_v22 = vsel %vm359_vm0, %v1699_v15, 0.0 }
 0x20e   : > { %v1471_v24 = vadd.f32 %v2575_v21, %v3021_v23  ;;  %v1465_v25 = vpop.f32.mrb[37].mxu1  ;;  %1832 = vadd.xlane.f32.xlu0 %v1831_v22  ;;  %v1702_v30 = vmul.f32 %v3028_v27, %v1631_v16 }
 0x20f   : > { %v1466_v26 = vadd.f32 %v3021_v23, %v1465_v25  ;;  %v1701_v19 = vmul.f32 %v3028_v27, %v1630_v20 }
 0x210   : > { %v1633_v28 = vmax.f32 %v1471_v24, 0.0  ;;  %v1840_v39 = vsel %vm359_vm0, %v1702_v30, 0.0 }
 0x211   : > { %v1632_v31 = vmax.f32 %v1466_v26, 0.0  ;;  %v2578_v32 = vpop.f32.mrb[38].mxu1  ;;  %1835 = vadd.xlane.f32.xlu1 %v1834_v29  ;;  %v1837_v33 = vsel %vm359_vm0, %v1701_v19, 0.0 }
 0x212   : > { %v1481_v34 = vadd.f32 %v2578_v32, %v3021_v23  ;;  %v1475_v35 = vpop.f32.mrb[39].mxu1  ;;  %1838 = vadd.xlane.f32.xlu0 %v1837_v33  ;;  %v1704_v40 = vmul.f32 %v3028_v27, %v1633_v28 }
 0x213   : > { %v1476_v36 = vadd.f32 %v3021_v23, %v1475_v35  ;;  %v1703_v37 = vmul.f32 %v3028_v27, %v1632_v31 }
 0x214   : > { %v1635_v38 = vmax.f32 %v1481_v34, 0.0  ;;  %v1846_v49 = vsel %vm359_vm0, %v1704_v40, 0.0 }
 0x215   : > { %v1634_v41 = vmax.f32 %v1476_v36, 0.0  ;;  %v2581_v42 = vpop.f32.mrb[40].mxu1  ;;  %1841 = vadd.xlane.f32.xlu1 %v1840_v39  ;;  %v1843_v43 = vsel %vm359_vm0, %v1703_v37, 0.0 }
 0x216   : > { %v1491_v44 = vadd.f32 %v2581_v42, %v3021_v23  ;;  %v1485_v45 = vpop.f32.mrb[41].mxu1  ;;  %1844 = vadd.xlane.f32.xlu0 %v1843_v43  ;;  %v1706_v50 = vmul.f32 %v3028_v27, %v1635_v38 }
 0x217   : > { %v1486_v46 = vadd.f32 %v3021_v23, %v1485_v45  ;;  %v1705_v47 = vmul.f32 %v3028_v27, %v1634_v41 }
 0x218   : > { %v1637_v48 = vmax.f32 %v1491_v44, 0.0  ;;  %v1852_v59 = vsel %vm359_vm0, %v1706_v50, 0.0 }
 0x219   : > { %v1636_v51 = vmax.f32 %v1486_v46, 0.0  ;;  %v2584_v52 = vpop.f32.mrb[42].mxu1  ;;  %1847 = vadd.xlane.f32.xlu1 %v1846_v49  ;;  %v1849_v53 = vsel %vm359_vm0, %v1705_v47, 0.0 }
 0x21a   : > { %v1501_v54 = vadd.f32 %v2584_v52, %v3021_v23  ;;  %v1495_v55 = vpop.f32.mrb[43].mxu1  ;;  %1850 = vadd.xlane.f32.xlu0 %v1849_v53  ;;  %v1708_v60 = vmul.f32 %v3028_v27, %v1637_v48 }
 0x21b   : > { %v1496_v56 = vadd.f32 %v3021_v23, %v1495_v55  ;;  %v1707_v57 = vmul.f32 %v3028_v27, %v1636_v51 }
 0x21c   : > { %v1639_v58 = vmax.f32 %v1501_v54, 0.0  ;;  %v1858_v5 = vsel %vm359_vm0, %v1708_v60, 0.0 }
 0x21d   : > { %v1638_v61 = vmax.f32 %v1496_v56, 0.0  ;;  %v2587_v62 = vpop.f32.mrb[44].mxu1  ;;  %1853 = vadd.xlane.f32.xlu1 %v1852_v59  ;;  %v1855_v63 = vsel %vm359_vm0, %v1707_v57, 0.0 }
 0x21e   : > { %v1511_v0 = vadd.f32 %v2587_v62, %v3021_v23  ;;  %v1505_v1 = vpop.f32.mrb[45].mxu1  ;;  %1856 = vadd.xlane.f32.xlu0 %v1855_v63  ;;  %v1710_v6 = vmul.f32 %v3028_v27, %v1639_v58 }
 0x21f   : > { %v1506_v2 = vadd.f32 %v3021_v23, %v1505_v1  ;;  %v1709_v3 = vmul.f32 %v3028_v27, %v1638_v61 }
 0x220   : > { %v1641_v4 = vmax.f32 %v1511_v0, 0.0  ;;  %v1864_v15 = vsel %vm359_vm0, %v1710_v6, 0.0 }
 0x221   : > { %v1640_v7 = vmax.f32 %v1506_v2, 0.0  ;;  %v2590_v8 = vpop.f32.mrb[46].mxu1  ;;  %1859 = vadd.xlane.f32.xlu1 %v1858_v5  ;;  %v1861_v9 = vsel %vm359_vm0, %v1709_v3, 0.0 }
 0x222   : > { %v1521_v10 = vadd.f32 %v2590_v8, %v3021_v23  ;;  %v1515_v11 = vpop.f32.mrb[47].mxu1  ;;  %1862 = vadd.xlane.f32.xlu0 %v1861_v9  ;;  %v1712_v16 = vmul.f32 %v3028_v27, %v1641_v4 }
 0x223   : > { %v1516_v12 = vadd.f32 %v3021_v23, %v1515_v11  ;;  %v1711_v13 = vmul.f32 %v3028_v27, %v1640_v7 }
 0x224   : > { %v1643_v14 = vmax.f32 %v1521_v10, 0.0  ;;  %v1870_v19 = vsel %vm359_vm0, %v1712_v16, 0.0 }
 0x225   : > { %v1642_v17 = vmax.f32 %v1516_v12, 0.0  ;;  %v2593_v18 = vpop.f32.mrb[48].mxu1  ;;  %1865 = vadd.xlane.f32.xlu1 %v1864_v15  ;;  %v1867_v20 = vsel %vm359_vm0, %v1711_v13, 0.0 }
 0x226   : > { %v1531_v21 = vadd.f32 %v2593_v18, %v3021_v23  ;;  %v1525_v22 = vpop.f32.mrb[49].mxu1  ;;  %1868 = vadd.xlane.f32.xlu0 %v1867_v20  ;;  %v1714_v28 = vmul.f32 %v3028_v27, %v1643_v14 }
 0x227   : > { %v1526_v24 = vadd.f32 %v3021_v23, %v1525_v22  ;;  %v1713_v25 = vmul.f32 %v3028_v27, %v1642_v17 }
 0x228   : > { %v1645_v26 = vmax.f32 %v1531_v21, 0.0  ;;  %v1876_v37 = vsel %vm359_vm0, %v1714_v28, 0.0 }
 0x229   : > { %v1644_v29 = vmax.f32 %v1526_v24, 0.0  ;;  %v2596_v30 = vpop.f32.mrb[50].mxu1  ;;  %1871 = vadd.xlane.f32.xlu1 %v1870_v19  ;;  %v1873_v31 = vsel %vm359_vm0, %v1713_v25, 0.0 }
 0x22a   : > { %v1541_v32 = vadd.f32 %v2596_v30, %v3021_v23  ;;  %v1535_v33 = vpop.f32.mrb[51].mxu1  ;;  %1874 = vadd.xlane.f32.xlu0 %v1873_v31  ;;  %v1716_v38 = vmul.f32 %v3028_v27, %v1645_v26 }
 0x22b   : > { %v1536_v34 = vadd.f32 %v3021_v23, %v1535_v33  ;;  %v1715_v35 = vmul.f32 %v3028_v27, %v1644_v29  ;;  %v3220_v33 = vld [vmem:[#allocation2] ss:$0 sm:$0xff] }
 0x22c   : > { %v1647_v36 = vmax.f32 %v1541_v32, 0.0  ;;  %v1882_v47 = vsel %vm359_vm0, %v1716_v38, 0.0 }
 0x22d   : > { %v1646_v39 = vmax.f32 %v1536_v34, 0.0  ;;  %v2599_v40 = vpop.f32.mrb[52].mxu1  ;;  %1877 = vadd.xlane.f32.xlu1 %v1876_v37  ;;  %v1879_v41 = vsel %vm359_vm0, %v1715_v35, 0.0 }
 0x22e   : > { %v1551_v42 = vadd.f32 %v2599_v40, %v3021_v23  ;;  %v1545_v43 = vpop.f32.mrb[53].mxu1  ;;  %1880 = vadd.xlane.f32.xlu0 %v1879_v41  ;;  %v1718_v48 = vmul.f32 %v3028_v27, %v1647_v36 }
 0x22f   : > { %v1546_v44 = vadd.f32 %v3021_v23, %v1545_v43  ;;  %v1717_v45 = vmul.f32 %v3028_v27, %v1646_v39 }
 0x230   : > { %v1649_v46 = vmax.f32 %v1551_v42, 0.0  ;;  %v1888_v57 = vsel %vm359_vm0, %v1718_v48, 0.0 }
 0x231   : > { %v1648_v49 = vmax.f32 %v1546_v44, 0.0  ;;  %v2602_v50 = vpop.f32.mrb[54].mxu1  ;;  %1883 = vadd.xlane.f32.xlu1 %v1882_v47  ;;  %v1885_v51 = vsel %vm359_vm0, %v1717_v45, 0.0 }
 0x232   : > { %v1561_v52 = vadd.f32 %v2602_v50, %v3021_v23  ;;  %v1555_v53 = vpop.f32.mrb[55].mxu1  ;;  %1886 = vadd.xlane.f32.xlu0 %v1885_v51  ;;  %v1720_v58 = vmul.f32 %v3028_v27, %v1649_v46 }
 0x233   : > { %v1556_v54 = vadd.f32 %v3021_v23, %v1555_v53  ;;  %v1719_v55 = vmul.f32 %v3028_v27, %v1648_v49 }
 0x234   : > { %v1651_v56 = vmax.f32 %v1561_v52, 0.0  ;;  %v1894_v3 = vsel %vm359_vm0, %v1720_v58, 0.0 }
 0x235   : > { %v1650_v59 = vmax.f32 %v1556_v54, 0.0  ;;  %v2605_v60 = vpop.f32.mrb[56].mxu1  ;;  %1889 = vadd.xlane.f32.xlu1 %v1888_v57  ;;  %v1891_v61 = vsel %vm359_vm0, %v1719_v55, 0.0 }
 0x236   : > { %v1571_v62 = vadd.f32 %v2605_v60, %v3021_v23  ;;  %v1565_v63 = vpop.f32.mrb[57].mxu1  ;;  %1892 = vadd.xlane.f32.xlu0 %v1891_v61  ;;  %v1722_v4 = vmul.f32 %v3028_v27, %v1651_v56 }
 0x237   : > { %v1566_v0 = vadd.f32 %v3021_v23, %v1565_v63  ;;  %v1721_v1 = vmul.f32 %v3028_v27, %v1650_v59 }
 0x238   : > { %v1653_v2 = vmax.f32 %v1571_v62, 0.0  ;;  %v1900_v13 = vsel %vm359_vm0, %v1722_v4, 0.0 }
 0x239   : > { %v1652_v5 = vmax.f32 %v1566_v0, 0.0  ;;  %v2608_v6 = vpop.f32.mrb[58].mxu1  ;;  %1895 = vadd.xlane.f32.xlu1 %v1894_v3  ;;  %v1897_v7 = vsel %vm359_vm0, %v1721_v1, 0.0 }
 0x23a   : > { %v1581_v8 = vadd.f32 %v2608_v6, %v3021_v23  ;;  %v1575_v9 = vpop.f32.mrb[59].mxu1  ;;  %1898 = vadd.xlane.f32.xlu0 %v1897_v7  ;;  %v1724_v14 = vmul.f32 %v3028_v27, %v1653_v2 }
 0x23b   : > { %v1576_v10 = vadd.f32 %v3021_v23, %v1575_v9  ;;  %v1723_v11 = vmul.f32 %v3028_v27, %v1652_v5 }
 0x23c   : > { %v1655_v12 = vmax.f32 %v1581_v8, 0.0  ;;  %v1906_v25 = vsel %vm359_vm0, %v1724_v14, 0.0 }
 0x23d   : > { %v1654_v15 = vmax.f32 %v1576_v10, 0.0  ;;  %v2611_v16 = vpop.f32.mrb[60].mxu1  ;;  %1901 = vadd.xlane.f32.xlu1 %v1900_v13  ;;  %v1903_v17 = vsel %vm359_vm0, %v1723_v11, 0.0 }
 0x23e   : > { %v1591_v18 = vadd.f32 %v2611_v16, %v3021_v23  ;;  %v1585_v20 = vpop.f32.mrb[61].mxu1  ;;  %1904 = vadd.xlane.f32.xlu0 %v1903_v17  ;;  %v1726_v26 = vmul.f32 %v3028_v27, %v1655_v12 }
 0x23f   : > { %v1586_v21 = vadd.f32 %v3021_v23, %v1585_v20  ;;  %v1725_v22 = vmul.f32 %v3028_v27, %v1654_v15 }
 0x240   : > { %v1657_v24 = vmax.f32 %v1591_v18, 0.0  ;;  %v1912_v30 = vsel %vm359_vm0, %v1726_v26, 0.0 }
 0x241   : > { %v1656_v19 = vmax.f32 %v1586_v21, 0.0  ;;  %1907 = vadd.xlane.f32.xlu1 %v1906_v25  ;;  %v1909_v28 = vsel %vm359_vm0, %v1725_v22, 0.0 }
 0x242   : > { %1910 = vadd.xlane.f32.xlu0 %v1909_v28  ;;  %v1728_v31 = vmul.f32 %v3028_v27, %v1657_v24 }
 0x243   : > { %v1727_v29 = vmul.f32 %v3028_v27, %v1656_v19 }
 0x244   : > { %v1918_v32 = vsel %vm359_vm0, %v1728_v31, 0.0 }
 0x245   : > { %1913 = vadd.xlane.f32.xlu1 %v1912_v30  ;;  %v1915_v23 = vsel %vm359_vm0, %v1727_v29, 0.0 }
 0x246   : > { %1916 = vadd.xlane.f32.xlu0 %v1915_v23 }
 0x249   : > { %1919 = vadd.xlane.f32.xlu1 %v1918_v32 }
 0x256   : > { %v1734_v27 = vpop.xlane.xlu0 %1733 }
 0x257   : > { %v1929_v34 = vadd.f32 %v3220_v33, %v1734_v27 }
 0x259   : > { %1994 = vst.msk [vmem:[%s3227_s20 + $0x8] sm:$0xff] %vm1992_vm2, %v1929_v34 }
 0x25a   : > { %v1740_v35 = vpop.xlane.xlu1 %1739  ;;  %v1731_v36 = vpop.xlane.xlu0 %1730 }
 0x25b   : > { %v1931_v37 = vadd.f32 %v3220_v33, %v1740_v35  ;;  %v1928_v38 = vadd.f32 %v3220_v33, %v1731_v36 }
 0x25d   : > { %1996 = vst.msk [vmem:[%s3227_s20 + $0x18] sm:$0xff] %vm1992_vm2, %v1931_v37  ;;  %1993 = vst.msk [vmem:[%s3227_s20] sm:$0xff] %vm1992_vm2, %v1928_v38 }
 0x25e   : > { %v1737_v39 = vpop.xlane.xlu1 %1736 }
 0x25f   : > { %v1930_v40 = vadd.f32 %v3220_v33, %v1737_v39  ;;  %v1743_v41 = vpop.xlane.xlu0 %1742 }
 0x260   : > { %v1932_v42 = vadd.f32 %v3220_v33, %v1743_v41 }
 0x261   : > { %1995 = vst.msk [vmem:[%s3227_s20 + $0x10] sm:$0xff] %vm1992_vm2, %v1930_v40 }
 0x262   : > { %1997 = vst.msk [vmem:[%s3227_s20 + $0x20] sm:$0xff] %vm1992_vm2, %v1932_v42  ;;  %v1746_v43 = vpop.xlane.xlu1 %1745 }
 0x263   : > { %v1933_v44 = vadd.f32 %v3220_v33, %v1746_v43  ;;  %v1749_v45 = vpop.xlane.xlu0 %1748 }
 0x264   : > { %v1934_v46 = vadd.f32 %v3220_v33, %v1749_v45 }
 0x265   : > { %1998 = vst.msk [vmem:[%s3227_s20 + $0x28] sm:$0xff] %vm1992_vm2, %v1933_v44 }
 0x266   : > { %1999 = vst.msk [vmem:[%s3227_s20 + $0x30] sm:$0xff] %vm1992_vm2, %v1934_v46  ;;  %v1752_v47 = vpop.xlane.xlu1 %1751 }
 0x267   : > { %v1935_v48 = vadd.f32 %v3220_v33, %v1752_v47  ;;  %v1755_v49 = vpop.xlane.xlu0 %1754 }
 0x268   : > { %v1936_v50 = vadd.f32 %v3220_v33, %v1755_v49 }
 0x269   : > { %2000 = vst.msk [vmem:[%s3227_s20 + $0x38] sm:$0xff] %vm1992_vm2, %v1935_v48 }
 0x26a   : > { %2001 = vst.msk [vmem:[%s3227_s20 + $0x40] sm:$0xff] %vm1992_vm2, %v1936_v50  ;;  %v1758_v51 = vpop.xlane.xlu1 %1757 }
 0x26b   : > { %v1937_v52 = vadd.f32 %v3220_v33, %v1758_v51  ;;  %v1761_v53 = vpop.xlane.xlu0 %1760 }
 0x26c   : > { %v1938_v54 = vadd.f32 %v3220_v33, %v1761_v53 }
 0x26d   : > { %2002 = vst.msk [vmem:[%s3227_s20 + $0x48] sm:$0xff] %vm1992_vm2, %v1937_v52 }
 0x26e   : > { %2003 = vst.msk [vmem:[%s3227_s20 + $0x50] sm:$0xff] %vm1992_vm2, %v1938_v54  ;;  %v1764_v55 = vpop.xlane.xlu1 %1763 }
 0x26f   : > { %v1939_v56 = vadd.f32 %v3220_v33, %v1764_v55  ;;  %v1767_v57 = vpop.xlane.xlu0 %1766 }
 0x270   : > { %v1940_v58 = vadd.f32 %v3220_v33, %v1767_v57 }
 0x271   : > { %2004 = vst.msk [vmem:[%s3227_s20 + $0x58] sm:$0xff] %vm1992_vm2, %v1939_v56 }
 0x272   : > { %2005 = vst.msk [vmem:[%s3227_s20 + $0x60] sm:$0xff] %vm1992_vm2, %v1940_v58  ;;  %v1770_v59 = vpop.xlane.xlu1 %1769 }
 0x273   : > { %v1941_v60 = vadd.f32 %v3220_v33, %v1770_v59  ;;  %v1773_v61 = vpop.xlane.xlu0 %1772 }
 0x274   : > { %v1942_v62 = vadd.f32 %v3220_v33, %v1773_v61 }
 0x275   : > { %2006 = vst.msk [vmem:[%s3227_s20 + $0x68] sm:$0xff] %vm1992_vm2, %v1941_v60 }
 0x276   : > { %2007 = vst.msk [vmem:[%s3227_s20 + $0x70] sm:$0xff] %vm1992_vm2, %v1942_v62  ;;  %v1776_v63 = vpop.xlane.xlu1 %1775 }
 0x277   : > { %v1943_v0 = vadd.f32 %v3220_v33, %v1776_v63  ;;  %v1779_v1 = vpop.xlane.xlu0 %1778 }
 0x278   : > { %v1944_v2 = vadd.f32 %v3220_v33, %v1779_v1 }
 0x279   : > { %2008 = vst.msk [vmem:[%s3227_s20 + $0x78] sm:$0xff] %vm1992_vm2, %v1943_v0 }
 0x27a   : > { %2009 = vst.msk [vmem:[%s3227_s20 + $0x80] sm:$0xff] %vm1992_vm2, %v1944_v2  ;;  %v1782_v3 = vpop.xlane.xlu1 %1781 }
 0x27b   : > { %v1945_v4 = vadd.f32 %v3220_v33, %v1782_v3  ;;  %v1785_v5 = vpop.xlane.xlu0 %1784 }
 0x27c   : > { %v1946_v6 = vadd.f32 %v3220_v33, %v1785_v5 }
 0x27d   : > { %2010 = vst.msk [vmem:[%s3227_s20 + $0x88] sm:$0xff] %vm1992_vm2, %v1945_v4 }
 0x27e   : > { %2011 = vst.msk [vmem:[%s3227_s20 + $0x90] sm:$0xff] %vm1992_vm2, %v1946_v6  ;;  %v1788_v7 = vpop.xlane.xlu1 %1787 }
 0x27f   : > { %v1947_v8 = vadd.f32 %v3220_v33, %v1788_v7  ;;  %v1791_v9 = vpop.xlane.xlu0 %1790 }
 0x280   : > { %v1948_v10 = vadd.f32 %v3220_v33, %v1791_v9 }
 0x281   : > { %2012 = vst.msk [vmem:[%s3227_s20 + $0x98] sm:$0xff] %vm1992_vm2, %v1947_v8 }
 0x282   : > { %2013 = vst.msk [vmem:[%s3227_s20 + $0xa0] sm:$0xff] %vm1992_vm2, %v1948_v10  ;;  %v1794_v11 = vpop.xlane.xlu1 %1793 }
 0x283   : > { %v1949_v12 = vadd.f32 %v3220_v33, %v1794_v11  ;;  %v1797_v13 = vpop.xlane.xlu0 %1796 }
 0x284   : > { %v1950_v14 = vadd.f32 %v3220_v33, %v1797_v13 }
 0x285   : > { %2014 = vst.msk [vmem:[%s3227_s20 + $0xa8] sm:$0xff] %vm1992_vm2, %v1949_v12 }
 0x286   : > { %2015 = vst.msk [vmem:[%s3227_s20 + $0xb0] sm:$0xff] %vm1992_vm2, %v1950_v14  ;;  %v1800_v15 = vpop.xlane.xlu1 %1799 }
 0x287   : > { %v1951_v16 = vadd.f32 %v3220_v33, %v1800_v15  ;;  %v1803_v17 = vpop.xlane.xlu0 %1802 }
 0x288   : > { %v1952_v18 = vadd.f32 %v3220_v33, %v1803_v17 }
 0x289   : > { %2016 = vst.msk [vmem:[%s3227_s20 + $0xb8] sm:$0xff] %vm1992_vm2, %v1951_v16 }
 0x28a   : > { %2017 = vst.msk [vmem:[%s3227_s20 + $0xc0] sm:$0xff] %vm1992_vm2, %v1952_v18  ;;  %v1806_v20 = vpop.xlane.xlu1 %1805 }
 0x28b   : > { %v1953_v21 = vadd.f32 %v3220_v33, %v1806_v20  ;;  %v1809_v22 = vpop.xlane.xlu0 %1808 }
 0x28c   : > { %v1954_v24 = vadd.f32 %v3220_v33, %v1809_v22 }
 0x28d   : > { %2018 = vst.msk [vmem:[%s3227_s20 + $0xc8] sm:$0xff] %vm1992_vm2, %v1953_v21 }
 0x28e   : > { %2019 = vst.msk [vmem:[%s3227_s20 + $0xd0] sm:$0xff] %vm1992_vm2, %v1954_v24  ;;  %v1812_v25 = vpop.xlane.xlu1 %1811 }
 0x28f   : > { %v1955_v26 = vadd.f32 %v3220_v33, %v1812_v25  ;;  %v1815_v19 = vpop.xlane.xlu0 %1814 }
 0x290   : > { %v1956_v28 = vadd.f32 %v3220_v33, %v1815_v19 }
 0x291   : > { %2020 = vst.msk [vmem:[%s3227_s20 + $0xd8] sm:$0xff] %vm1992_vm2, %v1955_v26 }
 0x292   : > { %2021 = vst.msk [vmem:[%s3227_s20 + $0xe0] sm:$0xff] %vm1992_vm2, %v1956_v28  ;;  %v1818_v29 = vpop.xlane.xlu1 %1817 }
 0x293   : > { %v1957_v30 = vadd.f32 %v3220_v33, %v1818_v29  ;;  %v1821_v31 = vpop.xlane.xlu0 %1820 }
 0x294   : > { %v1958_v23 = vadd.f32 %v3220_v33, %v1821_v31 }
 0x295   : > { %2022 = vst.msk [vmem:[%s3227_s20 + $0xe8] sm:$0xff] %vm1992_vm2, %v1957_v30 }
 0x296   : > { %2023 = vst.msk [vmem:[%s3227_s20 + $0xf0] sm:$0xff] %vm1992_vm2, %v1958_v23  ;;  %v1824_v32 = vpop.xlane.xlu1 %1823 }
 0x297   : > { %v1959_v27 = vadd.f32 %v3220_v33, %v1824_v32  ;;  %v1827_v34 = vpop.xlane.xlu0 %1826 }
 0x298   : > { %v1960_v35 = vadd.f32 %v3220_v33, %v1827_v34 }
 0x299   : > { %2024 = vst.msk [vmem:[%s3227_s20 + $0xf8] sm:$0xff] %vm1992_vm2, %v1959_v27 }
 0x29a   : > { %2025 = vst.msk [vmem:[%s3227_s20 + $0x100] sm:$0xff] %vm1992_vm2, %v1960_v35  ;;  %v1830_v36 = vpop.xlane.xlu1 %1829 }
 0x29b   : > { %v1961_v37 = vadd.f32 %v3220_v33, %v1830_v36  ;;  %v1833_v38 = vpop.xlane.xlu0 %1832 }
 0x29c   : > { %v1962_v39 = vadd.f32 %v3220_v33, %v1833_v38 }
 0x29d   : > { %2026 = vst.msk [vmem:[%s3227_s20 + $0x108] sm:$0xff] %vm1992_vm2, %v1961_v37 }
 0x29e   : > { %2027 = vst.msk [vmem:[%s3227_s20 + $0x110] sm:$0xff] %vm1992_vm2, %v1962_v39  ;;  %v1836_v40 = vpop.xlane.xlu1 %1835 }
 0x29f   : > { %v1963_v41 = vadd.f32 %v3220_v33, %v1836_v40  ;;  %v1839_v42 = vpop.xlane.xlu0 %1838 }
 0x2a0   : > { %v1964_v43 = vadd.f32 %v3220_v33, %v1839_v42 }
 0x2a1   : > { %2028 = vst.msk [vmem:[%s3227_s20 + $0x118] sm:$0xff] %vm1992_vm2, %v1963_v41 }
 0x2a2   : > { %2029 = vst.msk [vmem:[%s3227_s20 + $0x120] sm:$0xff] %vm1992_vm2, %v1964_v43  ;;  %v1842_v44 = vpop.xlane.xlu1 %1841 }
 0x2a3   : > { %v1965_v45 = vadd.f32 %v3220_v33, %v1842_v44  ;;  %v1845_v46 = vpop.xlane.xlu0 %1844 }
 0x2a4   : > { %v1966_v47 = vadd.f32 %v3220_v33, %v1845_v46 }
 0x2a5   : > { %2030 = vst.msk [vmem:[%s3227_s20 + $0x128] sm:$0xff] %vm1992_vm2, %v1965_v45 }
 0x2a6   : > { %2031 = vst.msk [vmem:[%s3227_s20 + $0x130] sm:$0xff] %vm1992_vm2, %v1966_v47  ;;  %v1848_v48 = vpop.xlane.xlu1 %1847 }
 0x2a7   : > { %v1967_v49 = vadd.f32 %v3220_v33, %v1848_v48  ;;  %v1851_v50 = vpop.xlane.xlu0 %1850 }
 0x2a8   : > { %v1968_v51 = vadd.f32 %v3220_v33, %v1851_v50 }
 0x2a9   : > { %2032 = vst.msk [vmem:[%s3227_s20 + $0x138] sm:$0xff] %vm1992_vm2, %v1967_v49 }
 0x2aa   : > { %2033 = vst.msk [vmem:[%s3227_s20 + $0x140] sm:$0xff] %vm1992_vm2, %v1968_v51  ;;  %v1854_v52 = vpop.xlane.xlu1 %1853 }
 0x2ab   : > { %v1969_v53 = vadd.f32 %v3220_v33, %v1854_v52  ;;  %v1857_v54 = vpop.xlane.xlu0 %1856 }
 0x2ac   : > { %v1970_v55 = vadd.f32 %v3220_v33, %v1857_v54 }
 0x2ad   : > { %2034 = vst.msk [vmem:[%s3227_s20 + $0x148] sm:$0xff] %vm1992_vm2, %v1969_v53 }
 0x2ae   : > { %2035 = vst.msk [vmem:[%s3227_s20 + $0x150] sm:$0xff] %vm1992_vm2, %v1970_v55  ;;  %v1860_v56 = vpop.xlane.xlu1 %1859 }
 0x2af   : > { %v1971_v57 = vadd.f32 %v3220_v33, %v1860_v56  ;;  %v1863_v58 = vpop.xlane.xlu0 %1862 }
 0x2b0   : > { %v1972_v59 = vadd.f32 %v3220_v33, %v1863_v58 }
 0x2b1   : > { %2036 = vst.msk [vmem:[%s3227_s20 + $0x158] sm:$0xff] %vm1992_vm2, %v1971_v57 }
 0x2b2   : > { %2037 = vst.msk [vmem:[%s3227_s20 + $0x160] sm:$0xff] %vm1992_vm2, %v1972_v59  ;;  %v1866_v60 = vpop.xlane.xlu1 %1865 }
 0x2b3   : > { %v1973_v61 = vadd.f32 %v3220_v33, %v1866_v60  ;;  %v1869_v62 = vpop.xlane.xlu0 %1868 }
 0x2b4   : > { %v1974_v63 = vadd.f32 %v3220_v33, %v1869_v62 }
 0x2b5   : > { %2038 = vst.msk [vmem:[%s3227_s20 + $0x168] sm:$0xff] %vm1992_vm2, %v1973_v61 }
 0x2b6   : > { %2039 = vst.msk [vmem:[%s3227_s20 + $0x170] sm:$0xff] %vm1992_vm2, %v1974_v63  ;;  %v1872_v0 = vpop.xlane.xlu1 %1871 }
 0x2b7   : > { %v1975_v1 = vadd.f32 %v3220_v33, %v1872_v0  ;;  %v1875_v2 = vpop.xlane.xlu0 %1874 }
 0x2b8   : > { %v1976_v3 = vadd.f32 %v3220_v33, %v1875_v2 }
 0x2b9   : > { %2040 = vst.msk [vmem:[%s3227_s20 + $0x178] sm:$0xff] %vm1992_vm2, %v1975_v1 }
 0x2ba   : > { %2041 = vst.msk [vmem:[%s3227_s20 + $0x180] sm:$0xff] %vm1992_vm2, %v1976_v3  ;;  %v1878_v4 = vpop.xlane.xlu1 %1877 }
 0x2bb   : > { %v1977_v5 = vadd.f32 %v3220_v33, %v1878_v4  ;;  %v1881_v6 = vpop.xlane.xlu0 %1880 }
 0x2bc   : > { %v1978_v7 = vadd.f32 %v3220_v33, %v1881_v6 }
 0x2bd   : > { %2042 = vst.msk [vmem:[%s3227_s20 + $0x188] sm:$0xff] %vm1992_vm2, %v1977_v5 }
 0x2be   : > { %2043 = vst.msk [vmem:[%s3227_s20 + $0x190] sm:$0xff] %vm1992_vm2, %v1978_v7  ;;  %v1884_v8 = vpop.xlane.xlu1 %1883 }
 0x2bf   : > { %v1979_v9 = vadd.f32 %v3220_v33, %v1884_v8  ;;  %v1887_v10 = vpop.xlane.xlu0 %1886 }
 0x2c0   : > { %v1980_v11 = vadd.f32 %v3220_v33, %v1887_v10 }
 0x2c1   : > { %2044 = vst.msk [vmem:[%s3227_s20 + $0x198] sm:$0xff] %vm1992_vm2, %v1979_v9 }
 0x2c2   : > { %2045 = vst.msk [vmem:[%s3227_s20 + $0x1a0] sm:$0xff] %vm1992_vm2, %v1980_v11  ;;  %v1890_v12 = vpop.xlane.xlu1 %1889 }
 0x2c3   : > { %v1981_v13 = vadd.f32 %v3220_v33, %v1890_v12  ;;  %v1893_v14 = vpop.xlane.xlu0 %1892 }
 0x2c4   : > { %v1982_v15 = vadd.f32 %v3220_v33, %v1893_v14 }
 0x2c5   : > { %2046 = vst.msk [vmem:[%s3227_s20 + $0x1a8] sm:$0xff] %vm1992_vm2, %v1981_v13 }
 0x2c6   : > { %2047 = vst.msk [vmem:[%s3227_s20 + $0x1b0] sm:$0xff] %vm1992_vm2, %v1982_v15  ;;  %v1896_v16 = vpop.xlane.xlu1 %1895 }
 0x2c7   : > { %v1983_v17 = vadd.f32 %v3220_v33, %v1896_v16  ;;  %v1899_v18 = vpop.xlane.xlu0 %1898 }
 0x2c8   : > { %v1984_v20 = vadd.f32 %v3220_v33, %v1899_v18 }
 0x2c9   : > { %2048 = vst.msk [vmem:[%s3227_s20 + $0x1b8] sm:$0xff] %vm1992_vm2, %v1983_v17 }
 0x2ca   : > { %2049 = vst.msk [vmem:[%s3227_s20 + $0x1c0] sm:$0xff] %vm1992_vm2, %v1984_v20  ;;  %v1902_v21 = vpop.xlane.xlu1 %1901 }
 0x2cb   : > { %v1985_v22 = vadd.f32 %v3220_v33, %v1902_v21  ;;  %v1905_v24 = vpop.xlane.xlu0 %1904 }
 0x2cc   : > { %v1986_v25 = vadd.f32 %v3220_v33, %v1905_v24 }
 0x2cd   : > { %2050 = vst.msk [vmem:[%s3227_s20 + $0x1c8] sm:$0xff] %vm1992_vm2, %v1985_v22 }
 0x2ce   : > { %2051 = vst.msk [vmem:[%s3227_s20 + $0x1d0] sm:$0xff] %vm1992_vm2, %v1986_v25  ;;  %v1908_v26 = vpop.xlane.xlu1 %1907 }
 0x2cf   : > { %v1987_v19 = vadd.f32 %v3220_v33, %v1908_v26  ;;  %v1911_v28 = vpop.xlane.xlu0 %1910 }
 0x2d0   : > { %v1988_v29 = vadd.f32 %v3220_v33, %v1911_v28 }
 0x2d1   : > { %2052 = vst.msk [vmem:[%s3227_s20 + $0x1d8] sm:$0xff] %vm1992_vm2, %v1987_v19 }
 0x2d2   : > { %2053 = vst.msk [vmem:[%s3227_s20 + $0x1e0] sm:$0xff] %vm1992_vm2, %v1988_v29  ;;  %v1914_v30 = vpop.xlane.xlu1 %1913 }
 0x2d3   : > { %v1989_v31 = vadd.f32 %v3220_v33, %v1914_v30  ;;  %v1917_v23 = vpop.xlane.xlu0 %1916 }
 0x2d4   : > { %v1990_v32 = vadd.f32 %v3220_v33, %v1917_v23 }
 0x2d5   : > { %2054 = vst.msk [vmem:[%s3227_s20 + $0x1e8] sm:$0xff] %vm1992_vm2, %v1989_v31 }
 0x2d6   : > { %2055 = vst.msk [vmem:[%s3227_s20 + $0x1f0] sm:$0xff] %vm1992_vm2, %v1990_v32  ;;  %v1920_v27 = vpop.xlane.xlu1 %1919 }
 0x2d7   : > { %v1991_v34 = vadd.f32 %v3220_v33, %v1920_v27 }
 0x2d9   : > { %2056 = vst.msk [vmem:[%s3227_s20 + $0x1f8] sm:$0xff] %vm1992_vm2, %v1991_v34 }
 0x2da PF: > { %s19_s26 = sadd.s32 1, %s2658_s26  }
 0x2db   : > { %p16_p4 = scmp.ge.s32.totalorder %s19_s26, 4  }
 0x2dd   :  { %18 = sbr.rel (!%p16_p4) target bundleno = 3 (0x3), region = 78 }

</bundles_post_ra>
